<compile_context>
chip_gen: v6e
topology: v6e:2x2x1
jax: 0.10.0
libtpu: 0.0.40
codegen_flags: <defaults>
</compile_context>

<pallas_src>
import functools

import jax
import jax.numpy as jnp
from jax.experimental import pallas as pl
from jax.experimental.pallas import tpu as pltpu


_BN_EPS = 1e-5


# ----------------------------------------------------------------------------
# Fused whole-stack kernel
# ----------------------------------------------------------------------------
def _tcn_stack_kernel(x_cur_ref, x_halo_ref, *rest,
                      block_meta, tile_l, r_total, halo_blk, compute_dtype):
    """One (batch, L-tile) grid point of the fused TCN stack.

    x_cur_ref  : (1, Cin, TILE_L)   current L-tile of the network input
    x_halo_ref : (1, Cin, HB)       last HB columns of the previous tile
                                    (garbage at tile 0 — masked to zero)
    rest       : per-block weights (w1,s1,sh1,w2,s2,sh2[,wd,bd]) ... , o_ref
    """
    o_ref = rest[-1]
    w_refs = rest[:-1]

    i = pl.program_id(1)
    base = i * tile_l - r_total          # global column index of window col 0
    w0 = tile_l + r_total

    # One (1, W0) lane iota reused (sliced) for every causal-padding mask.
    lane = jax.lax.broadcasted_iota(jnp.int32, (1, w0), 1)

    def mask_neg(v, col_off):
        # Zero columns whose global position (base + col) < 0.  A no-op for
        # every tile except tile 0 (since r_total <= tile_l).
        m = (lane[:, col_off:col_off + v.shape[1]] + base) >= 0
        return jnp.where(m, v, 0.0)

    x_cur = x_cur_ref[0].astype(jnp.float32)
    if r_total > 0:
        halo = x_halo_ref[0][:, halo_blk - r_total:].astype(jnp.float32)
        a = jnp.concatenate([halo, x_cur], axis=1)       # (Cin, TILE_L+r_total)
    else:
        a = x_cur
    a = mask_neg(a, 0)                   # conv zero-padding + tile-0 halo

    def dconv(w, src, n_out, k, d):
        # Causal dilated conv: output col m uses src cols m + j*d, j=0..k-1.
        c_src = w.shape[1] // k
        if k * c_src >= 128:
            # single MXU contraction with K = k*C (good MXU cadence)
            taps = jnp.concatenate(
                [src[:, j * d: j * d + n_out] for j in range(k)],
                axis=0).astype(compute_dtype)
            return jax.lax.dot_general(
                w.astype(compute_dtype), taps,
                dimension_numbers=(((1,), (0,)), ((), ())),
                preferred_element_type=jnp.float32)
        # tiny channel counts: k accumulated matmuls, no tap-concat copies
        acc = None
        for j in range(k):
            part = jax.lax.dot_general(
                w[:, j * c_src:(j + 1) * c_src].astype(compute_dtype),
                src[:, j * d: j * d + n_out].astype(compute_dtype),
                dimension_numbers=(((1,), (0,)), ((), ())),
                preferred_element_type=jnp.float32)
            acc = part if acc is None else acc + part
        return acc

    r_rem = r_total
    idx = 0
    for (k, d, has_ds) in block_meta:
        pad = (k - 1) * d
        hw = 2 * pad
        w1 = w_refs[idx][...]
        s1 = w_refs[idx + 1][...]
        sh1 = w_refs[idx + 2][...]
        w2 = w_refs[idx + 3][...]
        s2 = w_refs[idx + 4][...]
        sh2 = w_refs[idx + 5][...]
        idx += 6
        if has_ds:
            wd = w_refs[idx][...]
            bd = w_refs[idx + 1][...]
            idx += 2

        w_in = a.shape[1]
        # conv1 -> chomp -> bn1 -> relu1 (dropout = identity in eval mode);
        # emit `pad` extra leading columns so conv2's halo uses true h values.
        h = jnp.maximum(dconv(w1, a, w_in - pad, k, d) * s1 + sh1, 0.0)
        # conv2 zero-pads h on the left of position 0:
        h = mask_neg(h, (r_total - r_rem) + pad)
        # conv2 -> chomp -> bn2 -> relu2
        y = jnp.maximum(dconv(w2, h, w_in - hw, k, d) * s2 + sh2, 0.0)

        # residual branch (1x1 downsample or identity) + block relu
        a_res = a[:, hw:]
        if has_ds:
            res = jax.lax.dot_general(
                wd.astype(compute_dtype), a_res.astype(compute_dtype),
                dimension_numbers=(((1,), (0,)), ((), ())),
                preferred_element_type=jnp.float32) + bd
        else:
            res = a_res
        a = jnp.maximum(y + res, 0.0)

        r_rem -= hw
        if r_rem > 0:
            # next block's conv must see zeros at global positions < 0
            a = mask_neg(a, r_total - r_rem)

    o_ref[0] = a.astype(o_ref.dtype)


# ----------------------------------------------------------------------------
# Wrapper (plain-JAX glue around pallas_call)
# ----------------------------------------------------------------------------
def _full_spec(arr):
    n = arr.ndim
    return pl.BlockSpec(arr.shape, lambda b, i, _n=n: (0,) * _n)


def _round_up(x, m):
    return ((x + m - 1) // m) * m


def _vmem_limit_bytes():
    # generation-aware scoped-VMEM limit: ~96 MiB on v5e/v6e (128 MiB VMEM),
    # ~48 MiB on v7x (64 MiB VMEM).  Also lifts v5e's 16 MiB scoped default.
    try:
        cap = int(pltpu.get_tpu_info().vmem_capacity_bytes)
    except Exception:
        cap = 64 * 1024 * 1024
    return max(32 * 1024 * 1024, min(cap * 3 // 4, 100 * 1024 * 1024))


def _weights_bytes(params):
    return sum(int(v.size) * v.dtype.itemsize
               for p in params for v in p.values() if hasattr(v, "dtype"))


def _estimate_vmem(tl, hb, c_in0, params, io_itemsize, r_total):
    c_out_last = params[-1]["w1"].shape[0]
    total = 2 * io_itemsize * tl * (c_in0 + c_out_last)   # double-buffered tiles
    total += 2 * io_itemsize * hb * c_in0                 # halo block
    total += 2 * _weights_bytes(params)
    w = tl + r_total
    peak = 0
    c_prev = c_in0
    for p in params:
        c_out = p["w1"].shape[0]
        peak = max(peak, (c_prev + 3 * c_out) * w * 4)    # a, h, y, res (f32)
        c_prev = c_out
    return total + peak


def tcn_forward(x_ncl, params, tile_l=2048, compute_dtype=jnp.float32):
    """TemporalConvNet forward.  x_ncl: (B, C, L) NCL layout -> (B, C_last, L).

    compute_dtype=jnp.bfloat16 doubles MXU rate on v6e/v7x (accumulation stays
    f32 via preferred_element_type); passing bf16 inputs/outputs also halves
    HBM traffic.  Default f32 matches the PyTorch reference exactly.
    """
    B, C, L = x_ncl.shape
    r_total = sum(2 * (p["k"] - 1) * p["dilation"] for p in params)
    hb = max(128, _round_up(max(r_total, 1), 128))        # halo block (lanes)
    vmem_limit = _vmem_limit_bytes()
    itemsize = jnp.dtype(x_ncl.dtype).itemsize

    # Tile length: multiple of hb, >= hb, keep >= 2 L-tiles when the sequence
    # allows it (pipelining / megacore), and fit the VMEM budget.
    l_units = -(-L // hb)
    tl_units = max(1, _round_up(max(tile_l, hb), hb) // hb)
    if l_units >= 2:
        tl_units = min(tl_units, -(-l_units // 2))
    else:
        tl_units = 1
    while tl_units > 1 and _estimate_vmem(tl_units * hb, hb, C, params,
                                          itemsize, r_total) > vmem_limit // 2:
        tl_units -= 1
    tl = tl_units * hb
    nt = -(-L // tl)
    l_pad = nt * tl
    xp = x_ncl if l_pad == L else jnp.pad(
        x_ncl, ((0, 0), (0, 0), (0, l_pad - L)))   # right-pad only (causal)

    c_out_last = params[-1]["w1"].shape[0]
    block_meta = tuple((p["k"], p["dilation"], "wd" in p) for p in params)
    ratio = tl // hb

    in_specs = [
        pl.BlockSpec((1, C, tl), lambda b, i: (b, 0, i)),
        pl.BlockSpec((1, C, hb),
                     lambda b, i: (b, 0, jnp.maximum(i * ratio - 1, 0))),
    ]
    args = [xp, xp]
    for p in params:
        names = ["w1", "s1", "sh1", "w2", "s2", "sh2"]
        if "wd" in p:
            names += ["wd", "bd"]
        for n in names:
            v = p[n]
            if n in ("w1", "w2", "wd"):
                v = v.astype(compute_dtype)
            in_specs.append(_full_spec(v))
            args.append(v)

    kernel = functools.partial(
        _tcn_stack_kernel, block_meta=block_meta, tile_l=tl,
        r_total=r_total, halo_blk=hb, compute_dtype=compute_dtype)

    # advisory cost estimate (includes halo re-read + per-step weight DMA)
    flops = 0
    c_prev = C
    for p in params:
        c_out = p["w1"].shape[0]
        k = p["k"]
        flops += 2 * B * l_pad * (k * c_prev * c_out + k * c_out * c_out
                                  + (c_prev * c_out if "wd" in p else 0))
        c_prev = c_out
    bytes_accessed = (B * nt * (itemsize * C * (tl + hb) + _weights_bytes(params))
                      + B * l_pad * c_out_last * itemsize)

    out = pl.pallas_call(
        kernel,
        grid=(B, nt),
        in_specs=in_specs,
        out_specs=pl.BlockSpec((1, c_out_last, tl), lambda b, i: (b, 0, i)),
        out_shape=jax.ShapeDtypeStruct((B, c_out_last, l_pad), x_ncl.dtype),
        compiler_params=pltpu.CompilerParams(
            dimension_semantics=("parallel", "parallel"),
            vmem_limit_bytes=vmem_limit),
        cost_estimate=pl.CostEstimate(flops=flops, transcendentals=0,
                                      bytes_accessed=bytes_accessed),
    )(*args)
    return out[:, :, :L]
    # TODO(synk): nn.Dropout is stochastic; treated as identity (eval mode).


# ----------------------------------------------------------------------------
# Parameter construction (deterministic, mirrors the PyTorch module shapes)
# ----------------------------------------------------------------------------
def _weight_norm_effective(v, g):
    # v: (Cout, Cin, k), g: (Cout, 1, 1); w = g * v / ||v||_{per out channel}
    norm = jnp.sqrt(jnp.sum(v * v, axis=(1, 2), keepdims=True))
    return g * v / norm


def _make_conv_params(key, c_in, c_out, k):
    kv, kg, kb = jax.random.split(key, 3)
    std = jnp.sqrt(2.0 / (c_in * k))          # kaiming_normal_ on the conv weight
    v = jax.random.normal(kv, (c_out, c_in, k), jnp.float32) * std
    g = 1.0 + 0.1 * jax.random.normal(kg, (c_out, 1, 1), jnp.float32)
    bias = 0.1 * jax.random.normal(kb, (c_out,), jnp.float32)
    w = _weight_norm_effective(v, g)                            # (Cout, Cin, k)
    # (Cout, k*Cin): tap j occupies columns [j*Cin, (j+1)*Cin)
    w_flat = jnp.transpose(w, (0, 2, 1)).reshape(c_out, k * c_in)
    return w_flat, bias


def _make_bn_params(key, c):
    kg, kb = jax.random.split(key)
    gamma = 1.0 + 0.1 * jax.random.normal(kg, (c,), jnp.float32)
    beta = 0.1 * jax.random.normal(kb, (c,), jnp.float32)
    running_mean = jnp.zeros((c,), jnp.float32)
    running_var = jnp.ones((c,), jnp.float32)
    return gamma, beta, running_mean, running_var


def _fold_bias_bn(bias, gamma, beta, mean, var):
    # bn(conv + bias) = conv * scale + shift, reshaped to (Cout, 1) for NCL
    scale = gamma / jnp.sqrt(var + _BN_EPS)
    shift = (bias - mean) * scale + beta
    return scale.reshape(-1, 1), shift.reshape(-1, 1)


def init_tcn_params(key, num_inputs, num_channels, kernel_size=2):
    params = []
    for i, c_out in enumerate(num_channels):
        c_in = num_inputs if i == 0 else num_channels[i - 1]
        dilation = 2 ** i
        key, k1, k2, k3, k4, k5 = jax.random.split(key, 6)
        w1, b1 = _make_conv_params(k1, c_in, c_out, kernel_size)
        s1, sh1 = _fold_bias_bn(b1, *_make_bn_params(k2, c_out))
        w2, b2 = _make_conv_params(k3, c_out, c_out, kernel_size)
        s2, sh2 = _fold_bias_bn(b2, *_make_bn_params(k4, c_out))
        block = {"w1": w1, "s1": s1, "sh1": sh1,
                 "w2": w2, "s2": s2, "sh2": sh2,
                 "dilation": dilation, "k": kernel_size}
        if c_in != c_out:
            kd_w, kd_b = jax.random.split(k5)
            std = jnp.sqrt(2.0 / c_in)            # kaiming on the 1x1 conv
            wd = jax.random.normal(kd_w, (c_out, c_in, 1), jnp.float32) * std
            bd = 0.1 * jax.random.normal(kd_b, (c_out,), jnp.float32)
            block["wd"] = wd[:, :, 0]             # (Cout, Cin)
            block["bd"] = bd.reshape(-1, 1)       # (Cout, 1)
        params.append(block)
    return params


# ----------------------------------------------------------------------------
# Pure-jnp reference (NCL layout, f32)
# ----------------------------------------------------------------------------
def _tcn_forward_ref(x_ncl, params):
    x = x_ncl.astype(jnp.float32)

    def conv(xi, w_flat, d, k):
        c_out = w_flat.shape[0]
        c_in = w_flat.shape[1] // k
        w_taps = w_flat.reshape(c_out, k, c_in)
        pad = (k - 1) * d
        L = xi.shape[2]
        xp = jnp.pad(xi, ((0, 0), (0, 0), (pad, 0)))
        acc = 0.0
        for j in range(k):
            acc = acc + jnp.einsum("oc,bct->bot", w_taps[:, j, :],
                                   xp[:, :, j * d: j * d + L])
        return acc

    for p in params:
        d, k = p["dilation"], p["k"]
        h = jnp.maximum(conv(x, p["w1"], d, k) * p["s1"] + p["sh1"], 0.0)
        if "wd" in p:
            res = jnp.einsum("oc,bct->bot", p["wd"], x) + p["bd"]
        else:
            res = x
        y = jnp.maximum(conv(h, p["w2"], d, k) * p["s2"] + p["sh2"], 0.0)
        x = jnp.maximum(y + res, 0.0)
    return x


# ----------------------------------------------------------------------------
if __name__ == "__main__":
    key = jax.random.PRNGKey(0)
    k_in, k_par = jax.random.split(key)

    batch, num_inputs, seq_len = 2, 4, 200
    num_channels = (8, 8, 16)     # TemporalBlocks with dilations 1, 2, 4
    kernel_size = 2

    x = jax.random.normal(k_in, (batch, num_inputs, seq_len), jnp.float32)
    params = init_tcn_params(k_par, num_inputs, num_channels, kernel_size)

    # small tile_l request -> exercises multi-tile + halo + right-padding path
    out = tcn_forward(x, params, tile_l=128)
    out = jax.block_until_ready(out)
    assert out.shape == (batch, num_channels[-1], seq_len), out.shape

    ref = _tcn_forward_ref(x, params)
    err = float(jnp.max(jnp.abs(out - ref)))
    assert jnp.allclose(out, ref, atol=2e-3, rtol=2e-3), err

    print("KERNEL_OK")
</pallas_src>

<mosaic_0001>
module attributes {stable_mosaic.version = 11 : i64} {
  func.func @_tcn_stack_kernel(%arg0: i32, %arg1: i32, %arg2: memref<1x4x128xf32, #tpu.memory_space<vmem>>, %arg3: memref<1x4x128xf32, #tpu.memory_space<vmem>>, %arg4: memref<8x8xf32, #tpu.memory_space<vmem>>, %arg5: memref<8x1xf32, #tpu.memory_space<vmem>>, %arg6: memref<8x1xf32, #tpu.memory_space<vmem>>, %arg7: memref<8x16xf32, #tpu.memory_space<vmem>>, %arg8: memref<8x1xf32, #tpu.memory_space<vmem>>, %arg9: memref<8x1xf32, #tpu.memory_space<vmem>>, %arg10: memref<8x4xf32, #tpu.memory_space<vmem>>, %arg11: memref<8x1xf32, #tpu.memory_space<vmem>>, %arg12: memref<8x16xf32, #tpu.memory_space<vmem>>, %arg13: memref<8x1xf32, #tpu.memory_space<vmem>>, %arg14: memref<8x1xf32, #tpu.memory_space<vmem>>, %arg15: memref<8x16xf32, #tpu.memory_space<vmem>>, %arg16: memref<8x1xf32, #tpu.memory_space<vmem>>, %arg17: memref<8x1xf32, #tpu.memory_space<vmem>>, %arg18: memref<16x16xf32, #tpu.memory_space<vmem>>, %arg19: memref<16x1xf32, #tpu.memory_space<vmem>>, %arg20: memref<16x1xf32, #tpu.memory_space<vmem>>, %arg21: memref<16x32xf32, #tpu.memory_space<vmem>>, %arg22: memref<16x1xf32, #tpu.memory_space<vmem>>, %arg23: memref<16x1xf32, #tpu.memory_space<vmem>>, %arg24: memref<16x8xf32, #tpu.memory_space<vmem>>, %arg25: memref<16x1xf32, #tpu.memory_space<vmem>>, %arg26: memref<1x16x128xf32, #tpu.memory_space<vmem>>) attributes {dimension_semantics = [#tpu.dimension_semantics<parallel>, #tpu.dimension_semantics<parallel>], iteration_bounds = array<i64: 2, 2>, scalar_prefetch = 0 : i64, scratch_operands = 0 : i64, tpu.core_type = #tpu.core_type<tc>, window_params = [{transform_indices = @transform_0, window_bounds = array<i64: 1, 4, 128>}, {transform_indices = @transform_1, window_bounds = array<i64: 1, 4, 128>}, {pipeline_mode = #tpu.pipeline_mode<synchronous>, transform_indices = @transform_2, window_bounds = array<i64: 8, 8>}, {pipeline_mode = #tpu.pipeline_mode<synchronous>, transform_indices = @transform_3, window_bounds = array<i64: 8, 1>}, {pipeline_mode = #tpu.pipeline_mode<synchronous>, transform_indices = @transform_4, window_bounds = array<i64: 8, 1>}, {pipeline_mode = #tpu.pipeline_mode<synchronous>, transform_indices = @transform_5, window_bounds = array<i64: 8, 16>}, {pipeline_mode = #tpu.pipeline_mode<synchronous>, transform_indices = @transform_6, window_bounds = array<i64: 8, 1>}, {pipeline_mode = #tpu.pipeline_mode<synchronous>, transform_indices = @transform_7, window_bounds = array<i64: 8, 1>}, {pipeline_mode = #tpu.pipeline_mode<synchronous>, transform_indices = @transform_8, window_bounds = array<i64: 8, 4>}, {pipeline_mode = #tpu.pipeline_mode<synchronous>, transform_indices = @transform_9, window_bounds = array<i64: 8, 1>}, {pipeline_mode = #tpu.pipeline_mode<synchronous>, transform_indices = @transform_10, window_bounds = array<i64: 8, 16>}, {pipeline_mode = #tpu.pipeline_mode<synchronous>, transform_indices = @transform_11, window_bounds = array<i64: 8, 1>}, {pipeline_mode = #tpu.pipeline_mode<synchronous>, transform_indices = @transform_12, window_bounds = array<i64: 8, 1>}, {pipeline_mode = #tpu.pipeline_mode<synchronous>, transform_indices = @transform_13, window_bounds = array<i64: 8, 16>}, {pipeline_mode = #tpu.pipeline_mode<synchronous>, transform_indices = @transform_14, window_bounds = array<i64: 8, 1>}, {pipeline_mode = #tpu.pipeline_mode<synchronous>, transform_indices = @transform_15, window_bounds = array<i64: 8, 1>}, {pipeline_mode = #tpu.pipeline_mode<synchronous>, transform_indices = @transform_16, window_bounds = array<i64: 16, 16>}, {pipeline_mode = #tpu.pipeline_mode<synchronous>, transform_indices = @transform_17, window_bounds = array<i64: 16, 1>}, {pipeline_mode = #tpu.pipeline_mode<synchronous>, transform_indices = @transform_18, window_bounds = array<i64: 16, 1>}, {pipeline_mode = #tpu.pipeline_mode<synchronous>, transform_indices = @transform_19, window_bounds = array<i64: 16, 32>}, {pipeline_mode = #tpu.pipeline_mode<synchronous>, transform_indices = @transform_20, window_bounds = array<i64: 16, 1>}, {pipeline_mode = #tpu.pipeline_mode<synchronous>, transform_indices = @transform_21, window_bounds = array<i64: 16, 1>}, {pipeline_mode = #tpu.pipeline_mode<synchronous>, transform_indices = @transform_22, window_bounds = array<i64: 16, 8>}, {pipeline_mode = #tpu.pipeline_mode<synchronous>, transform_indices = @transform_23, window_bounds = array<i64: 16, 1>}, {transform_indices = @transform_24, window_bounds = array<i64: 1, 16, 128>}]} {
    %c128_i32 = arith.constant 128 : i32
    %0 = arith.muli %arg1, %c128_i32 : i32
    %c14_i32 = arith.constant 14 : i32
    %1 = arith.subi %0, %c14_i32 : i32
    %2 = tpu.iota {dimensions = array<i32: 1>} : vector<1x142xi32>
    %c0 = arith.constant 0 : index
    %c0_0 = arith.constant 0 : index
    %c0_1 = arith.constant 0 : index
    %3 = vector.load %arg2[%c0, %c0_0, %c0_1] : memref<1x4x128xf32, #tpu.memory_space<vmem>>, vector<1x4x128xf32>
    %4 = vector.shape_cast %3 : vector<1x4x128xf32> to vector<4x128xf32>
    %c0_2 = arith.constant 0 : index
    %c0_3 = arith.constant 0 : index
    %c0_4 = arith.constant 0 : index
    %5 = vector.load %arg3[%c0_2, %c0_3, %c0_4] : memref<1x4x128xf32, #tpu.memory_space<vmem>>, vector<1x4x128xf32>
    %6 = vector.shape_cast %5 : vector<1x4x128xf32> to vector<4x128xf32>
    %7 = vector.extract_strided_slice %6 {offsets = [0, 114], sizes = [4, 14], strides = [1, 1]} : vector<4x128xf32> to vector<4x14xf32>
    %8 = tpu.concatenate %7, %4 in 1 : vector<4x14xf32>, vector<4x128xf32> -> vector<4x142xf32>
    %9 = vector.broadcast %1 : i32 to vector<1x142xi32>
    %10 = arith.addi %2, %9 : vector<1x142xi32>
    %c0_i32 = arith.constant 0 : i32
    %11 = vector.broadcast %c0_i32 : i32 to vector<1x142xi32>
    %12 = arith.cmpi sge, %10, %11 : vector<1x142xi32>
    %cst = arith.constant 0.000000e+00 : f32
    %13 = vector.shape_cast %12 : vector<1x142xi1> to vector<1x142xi1>
    %14 = vector.broadcast %13 : vector<1x142xi1> to vector<4x142xi1>
    %15 = vector.broadcast %cst : f32 to vector<4x142xf32>
    %16 = arith.select %14, %8, %15 : vector<4x142xi1>, vector<4x142xf32>
    %c0_5 = arith.constant 0 : index
    %c0_6 = arith.constant 0 : index
    %17 = vector.load %arg4[%c0_5, %c0_6] : memref<8x8xf32, #tpu.memory_space<vmem>>, vector<8x8xf32>
    %c0_7 = arith.constant 0 : index
    %c0_8 = arith.constant 0 : index
    %18 = vector.load %arg5[%c0_7, %c0_8] : memref<8x1xf32, #tpu.memory_space<vmem>>, vector<8x1xf32>
    %c0_9 = arith.constant 0 : index
    %c0_10 = arith.constant 0 : index
    %19 = vector.load %arg6[%c0_9, %c0_10] : memref<8x1xf32, #tpu.memory_space<vmem>>, vector<8x1xf32>
    %c0_11 = arith.constant 0 : index
    %c0_12 = arith.constant 0 : index
    %20 = vector.load %arg7[%c0_11, %c0_12] : memref<8x16xf32, #tpu.memory_space<vmem>>, vector<8x16xf32>
    %c0_13 = arith.constant 0 : index
    %c0_14 = arith.constant 0 : index
    %21 = vector.load %arg8[%c0_13, %c0_14] : memref<8x1xf32, #tpu.memory_space<vmem>>, vector<8x1xf32>
    %c0_15 = arith.constant 0 : index
    %c0_16 = arith.constant 0 : index
    %22 = vector.load %arg9[%c0_15, %c0_16] : memref<8x1xf32, #tpu.memory_space<vmem>>, vector<8x1xf32>
    %c0_17 = arith.constant 0 : index
    %c0_18 = arith.constant 0 : index
    %23 = vector.load %arg10[%c0_17, %c0_18] : memref<8x4xf32, #tpu.memory_space<vmem>>, vector<8x4xf32>
    %c0_19 = arith.constant 0 : index
    %c0_20 = arith.constant 0 : index
    %24 = vector.load %arg11[%c0_19, %c0_20] : memref<8x1xf32, #tpu.memory_space<vmem>>, vector<8x1xf32>
    %25 = vector.extract_strided_slice %17 {offsets = [0, 0], sizes = [8, 4], strides = [1, 1]} : vector<8x8xf32> to vector<8x4xf32>
    %26 = vector.extract_strided_slice %16 {offsets = [0, 0], sizes = [4, 141], strides = [1, 1]} : vector<4x142xf32> to vector<4x141xf32>
    %cst_21 = arith.constant dense<0.000000e+00> : vector<8x141xf32>
    %27 = tpu.matmul %25, %26, %cst_21 {dimension_numbers = #tpu.dot_dimension_numbers<[1], [0], [0], [1], [0, 0, 1, 1], [], []>} : vector<8x4xf32>, vector<4x141xf32>, vector<8x141xf32> -> vector<8x141xf32>
    %28 = vector.extract_strided_slice %17 {offsets = [0, 4], sizes = [8, 4], strides = [1, 1]} : vector<8x8xf32> to vector<8x4xf32>
    %29 = vector.extract_strided_slice %16 {offsets = [0, 1], sizes = [4, 141], strides = [1, 1]} : vector<4x142xf32> to vector<4x141xf32>
    %cst_22 = arith.constant dense<0.000000e+00> : vector<8x141xf32>
    %30 = tpu.matmul %28, %29, %cst_22 {dimension_numbers = #tpu.dot_dimension_numbers<[1], [0], [0], [1], [0, 0, 1, 1], [], []>} : vector<8x4xf32>, vector<4x141xf32>, vector<8x141xf32> -> vector<8x141xf32>
    %31 = arith.addf %27, %30 : vector<8x141xf32>
    %32 = vector.broadcast %18 : vector<8x1xf32> to vector<8x141xf32>
    %33 = arith.mulf %31, %32 : vector<8x141xf32>
    %34 = vector.broadcast %19 : vector<8x1xf32> to vector<8x141xf32>
    %35 = arith.addf %33, %34 : vector<8x141xf32>
    %cst_23 = arith.constant 0.000000e+00 : f32
    %36 = vector.broadcast %cst_23 : f32 to vector<8x141xf32>
    %37 = arith.maximumf %35, %36 : vector<8x141xf32>
    %38 = vector.extract_strided_slice %2 {offsets = [0, 1], sizes = [1, 141], strides = [1, 1]} : vector<1x142xi32> to vector<1x141xi32>
    %39 = vector.broadcast %1 : i32 to vector<1x141xi32>
    %40 = arith.addi %38, %39 : vector<1x141xi32>
    %c0_i32_24 = arith.constant 0 : i32
    %41 = vector.broadcast %c0_i32_24 : i32 to vector<1x141xi32>
    %42 = arith.cmpi sge, %40, %41 : vector<1x141xi32>
    %cst_25 = arith.constant 0.000000e+00 : f32
    %43 = vector.shape_cast %42 : vector<1x141xi1> to vector<1x141xi1>
    %44 = vector.broadcast %43 : vector<1x141xi1> to vector<8x141xi1>
    %45 = vector.broadcast %cst_25 : f32 to vector<8x141xf32>
    %46 = arith.select %44, %37, %45 : vector<8x141xi1>, vector<8x141xf32>
    %47 = vector.extract_strided_slice %20 {offsets = [0, 0], sizes = [8, 8], strides = [1, 1]} : vector<8x16xf32> to vector<8x8xf32>
    %48 = vector.extract_strided_slice %46 {offsets = [0, 0], sizes = [8, 140], strides = [1, 1]} : vector<8x141xf32> to vector<8x140xf32>
    %cst_26 = arith.constant dense<0.000000e+00> : vector<8x140xf32>
    %49 = tpu.matmul %47, %48, %cst_26 {dimension_numbers = #tpu.dot_dimension_numbers<[1], [0], [0], [1], [0, 0, 1, 1], [], []>} : vector<8x8xf32>, vector<8x140xf32>, vector<8x140xf32> -> vector<8x140xf32>
    %50 = vector.extract_strided_slice %20 {offsets = [0, 8], sizes = [8, 8], strides = [1, 1]} : vector<8x16xf32> to vector<8x8xf32>
    %51 = vector.extract_strided_slice %46 {offsets = [0, 1], sizes = [8, 140], strides = [1, 1]} : vector<8x141xf32> to vector<8x140xf32>
    %cst_27 = arith.constant dense<0.000000e+00> : vector<8x140xf32>
    %52 = tpu.matmul %50, %51, %cst_27 {dimension_numbers = #tpu.dot_dimension_numbers<[1], [0], [0], [1], [0, 0, 1, 1], [], []>} : vector<8x8xf32>, vector<8x140xf32>, vector<8x140xf32> -> vector<8x140xf32>
    %53 = arith.addf %49, %52 : vector<8x140xf32>
    %54 = vector.broadcast %21 : vector<8x1xf32> to vector<8x140xf32>
    %55 = arith.mulf %53, %54 : vector<8x140xf32>
    %56 = vector.broadcast %22 : vector<8x1xf32> to vector<8x140xf32>
    %57 = arith.addf %55, %56 : vector<8x140xf32>
    %cst_28 = arith.constant 0.000000e+00 : f32
    %58 = vector.broadcast %cst_28 : f32 to vector<8x140xf32>
    %59 = arith.maximumf %57, %58 : vector<8x140xf32>
    %60 = vector.extract_strided_slice %16 {offsets = [0, 2], sizes = [4, 140], strides = [1, 1]} : vector<4x142xf32> to vector<4x140xf32>
    %cst_29 = arith.constant dense<0.000000e+00> : vector<8x140xf32>
    %61 = tpu.matmul %23, %60, %cst_29 {dimension_numbers = #tpu.dot_dimension_numbers<[1], [0], [0], [1], [0, 0, 1, 1], [], []>} : vector<8x4xf32>, vector<4x140xf32>, vector<8x140xf32> -> vector<8x140xf32>
    %62 = vector.broadcast %24 : vector<8x1xf32> to vector<8x140xf32>
    %63 = arith.addf %61, %62 : vector<8x140xf32>
    %64 = arith.addf %59, %63 : vector<8x140xf32>
    %cst_30 = arith.constant 0.000000e+00 : f32
    %65 = vector.broadcast %cst_30 : f32 to vector<8x140xf32>
    %66 = arith.maximumf %64, %65 : vector<8x140xf32>
    %67 = vector.extract_strided_slice %2 {offsets = [0, 2], sizes = [1, 140], strides = [1, 1]} : vector<1x142xi32> to vector<1x140xi32>
    %68 = vector.broadcast %1 : i32 to vector<1x140xi32>
    %69 = arith.addi %67, %68 : vector<1x140xi32>
    %c0_i32_31 = arith.constant 0 : i32
    %70 = vector.broadcast %c0_i32_31 : i32 to vector<1x140xi32>
    %71 = arith.cmpi sge, %69, %70 : vector<1x140xi32>
    %cst_32 = arith.constant 0.000000e+00 : f32
    %72 = vector.shape_cast %71 : vector<1x140xi1> to vector<1x140xi1>
    %73 = vector.broadcast %72 : vector<1x140xi1> to vector<8x140xi1>
    %74 = vector.broadcast %cst_32 : f32 to vector<8x140xf32>
    %75 = arith.select %73, %66, %74 : vector<8x140xi1>, vector<8x140xf32>
    %c0_33 = arith.constant 0 : index
    %c0_34 = arith.constant 0 : index
    %76 = vector.load %arg12[%c0_33, %c0_34] : memref<8x16xf32, #tpu.memory_space<vmem>>, vector<8x16xf32>
    %c0_35 = arith.constant 0 : index
    %c0_36 = arith.constant 0 : index
    %77 = vector.load %arg13[%c0_35, %c0_36] : memref<8x1xf32, #tpu.memory_space<vmem>>, vector<8x1xf32>
    %c0_37 = arith.constant 0 : index
    %c0_38 = arith.constant 0 : index
    %78 = vector.load %arg14[%c0_37, %c0_38] : memref<8x1xf32, #tpu.memory_space<vmem>>, vector<8x1xf32>
    %c0_39 = arith.constant 0 : index
    %c0_40 = arith.constant 0 : index
    %79 = vector.load %arg15[%c0_39, %c0_40] : memref<8x16xf32, #tpu.memory_space<vmem>>, vector<8x16xf32>
    %c0_41 = arith.constant 0 : index
    %c0_42 = arith.constant 0 : index
    %80 = vector.load %arg16[%c0_41, %c0_42] : memref<8x1xf32, #tpu.memory_space<vmem>>, vector<8x1xf32>
    %c0_43 = arith.constant 0 : index
    %c0_44 = arith.constant 0 : index
    %81 = vector.load %arg17[%c0_43, %c0_44] : memref<8x1xf32, #tpu.memory_space<vmem>>, vector<8x1xf32>
    %82 = vector.extract_strided_slice %76 {offsets = [0, 0], sizes = [8, 8], strides = [1, 1]} : vector<8x16xf32> to vector<8x8xf32>
    %83 = vector.extract_strided_slice %75 {offsets = [0, 0], sizes = [8, 138], strides = [1, 1]} : vector<8x140xf32> to vector<8x138xf32>
    %cst_45 = arith.constant dense<0.000000e+00> : vector<8x138xf32>
    %84 = tpu.matmul %82, %83, %cst_45 {dimension_numbers = #tpu.dot_dimension_numbers<[1], [0], [0], [1], [0, 0, 1, 1], [], []>} : vector<8x8xf32>, vector<8x138xf32>, vector<8x138xf32> -> vector<8x138xf32>
    %85 = vector.extract_strided_slice %76 {offsets = [0, 8], sizes = [8, 8], strides = [1, 1]} : vector<8x16xf32> to vector<8x8xf32>
    %86 = vector.extract_strided_slice %75 {offsets = [0, 2], sizes = [8, 138], strides = [1, 1]} : vector<8x140xf32> to vector<8x138xf32>
    %cst_46 = arith.constant dense<0.000000e+00> : vector<8x138xf32>
    %87 = tpu.matmul %85, %86, %cst_46 {dimension_numbers = #tpu.dot_dimension_numbers<[1], [0], [0], [1], [0, 0, 1, 1], [], []>} : vector<8x8xf32>, vector<8x138xf32>, vector<8x138xf32> -> vector<8x138xf32>
    %88 = arith.addf %84, %87 : vector<8x138xf32>
    %89 = vector.broadcast %77 : vector<8x1xf32> to vector<8x138xf32>
    %90 = arith.mulf %88, %89 : vector<8x138xf32>
    %91 = vector.broadcast %78 : vector<8x1xf32> to vector<8x138xf32>
    %92 = arith.addf %90, %91 : vector<8x138xf32>
    %cst_47 = arith.constant 0.000000e+00 : f32
    %93 = vector.broadcast %cst_47 : f32 to vector<8x138xf32>
    %94 = arith.maximumf %92, %93 : vector<8x138xf32>
    %95 = vector.extract_strided_slice %2 {offsets = [0, 4], sizes = [1, 138], strides = [1, 1]} : vector<1x142xi32> to vector<1x138xi32>
    %96 = vector.broadcast %1 : i32 to vector<1x138xi32>
    %97 = arith.addi %95, %96 : vector<1x138xi32>
    %c0_i32_48 = arith.constant 0 : i32
    %98 = vector.broadcast %c0_i32_48 : i32 to vector<1x138xi32>
    %99 = arith.cmpi sge, %97, %98 : vector<1x138xi32>
    %cst_49 = arith.constant 0.000000e+00 : f32
    %100 = vector.shape_cast %99 : vector<1x138xi1> to vector<1x138xi1>
    %101 = vector.broadcast %100 : vector<1x138xi1> to vector<8x138xi1>
    %102 = vector.broadcast %cst_49 : f32 to vector<8x138xf32>
    %103 = arith.select %101, %94, %102 : vector<8x138xi1>, vector<8x138xf32>
    %104 = vector.extract_strided_slice %79 {offsets = [0, 0], sizes = [8, 8], strides = [1, 1]} : vector<8x16xf32> to vector<8x8xf32>
    %105 = vector.extract_strided_slice %103 {offsets = [0, 0], sizes = [8, 136], strides = [1, 1]} : vector<8x138xf32> to vector<8x136xf32>
    %cst_50 = arith.constant dense<0.000000e+00> : vector<8x136xf32>
    %106 = tpu.matmul %104, %105, %cst_50 {dimension_numbers = #tpu.dot_dimension_numbers<[1], [0], [0], [1], [0, 0, 1, 1], [], []>} : vector<8x8xf32>, vector<8x136xf32>, vector<8x136xf32> -> vector<8x136xf32>
    %107 = vector.extract_strided_slice %79 {offsets = [0, 8], sizes = [8, 8], strides = [1, 1]} : vector<8x16xf32> to vector<8x8xf32>
    %108 = vector.extract_strided_slice %103 {offsets = [0, 2], sizes = [8, 136], strides = [1, 1]} : vector<8x138xf32> to vector<8x136xf32>
    %cst_51 = arith.constant dense<0.000000e+00> : vector<8x136xf32>
    %109 = tpu.matmul %107, %108, %cst_51 {dimension_numbers = #tpu.dot_dimension_numbers<[1], [0], [0], [1], [0, 0, 1, 1], [], []>} : vector<8x8xf32>, vector<8x136xf32>, vector<8x136xf32> -> vector<8x136xf32>
    %110 = arith.addf %106, %109 : vector<8x136xf32>
    %111 = vector.broadcast %80 : vector<8x1xf32> to vector<8x136xf32>
    %112 = arith.mulf %110, %111 : vector<8x136xf32>
    %113 = vector.broadcast %81 : vector<8x1xf32> to vector<8x136xf32>
    %114 = arith.addf %112, %113 : vector<8x136xf32>
    %cst_52 = arith.constant 0.000000e+00 : f32
    %115 = vector.broadcast %cst_52 : f32 to vector<8x136xf32>
    %116 = arith.maximumf %114, %115 : vector<8x136xf32>
    %117 = vector.extract_strided_slice %75 {offsets = [0, 4], sizes = [8, 136], strides = [1, 1]} : vector<8x140xf32> to vector<8x136xf32>
    %118 = arith.addf %116, %117 : vector<8x136xf32>
    %cst_53 = arith.constant 0.000000e+00 : f32
    %119 = vector.broadcast %cst_53 : f32 to vector<8x136xf32>
    %120 = arith.maximumf %118, %119 : vector<8x136xf32>
    %121 = vector.extract_strided_slice %2 {offsets = [0, 6], sizes = [1, 136], strides = [1, 1]} : vector<1x142xi32> to vector<1x136xi32>
    %122 = vector.broadcast %1 : i32 to vector<1x136xi32>
    %123 = arith.addi %121, %122 : vector<1x136xi32>
    %c0_i32_54 = arith.constant 0 : i32
    %124 = vector.broadcast %c0_i32_54 : i32 to vector<1x136xi32>
    %125 = arith.cmpi sge, %123, %124 : vector<1x136xi32>
    %cst_55 = arith.constant 0.000000e+00 : f32
    %126 = vector.shape_cast %125 : vector<1x136xi1> to vector<1x136xi1>
    %127 = vector.broadcast %126 : vector<1x136xi1> to vector<8x136xi1>
    %128 = vector.broadcast %cst_55 : f32 to vector<8x136xf32>
    %129 = arith.select %127, %120, %128 : vector<8x136xi1>, vector<8x136xf32>
    %c0_56 = arith.constant 0 : index
    %c0_57 = arith.constant 0 : index
    %130 = vector.load %arg18[%c0_56, %c0_57] : memref<16x16xf32, #tpu.memory_space<vmem>>, vector<16x16xf32>
    %c0_58 = arith.constant 0 : index
    %c0_59 = arith.constant 0 : index
    %131 = vector.load %arg19[%c0_58, %c0_59] : memref<16x1xf32, #tpu.memory_space<vmem>>, vector<16x1xf32>
    %c0_60 = arith.constant 0 : index
    %c0_61 = arith.constant 0 : index
    %132 = vector.load %arg20[%c0_60, %c0_61] : memref<16x1xf32, #tpu.memory_space<vmem>>, vector<16x1xf32>
    %c0_62 = arith.constant 0 : index
    %c0_63 = arith.constant 0 : index
    %133 = vector.load %arg21[%c0_62, %c0_63] : memref<16x32xf32, #tpu.memory_space<vmem>>, vector<16x32xf32>
    %c0_64 = arith.constant 0 : index
    %c0_65 = arith.constant 0 : index
    %134 = vector.load %arg22[%c0_64, %c0_65] : memref<16x1xf32, #tpu.memory_space<vmem>>, vector<16x1xf32>
    %c0_66 = arith.constant 0 : index
    %c0_67 = arith.constant 0 : index
    %135 = vector.load %arg23[%c0_66, %c0_67] : memref<16x1xf32, #tpu.memory_space<vmem>>, vector<16x1xf32>
    %c0_68 = arith.constant 0 : index
    %c0_69 = arith.constant 0 : index
    %136 = vector.load %arg24[%c0_68, %c0_69] : memref<16x8xf32, #tpu.memory_space<vmem>>, vector<16x8xf32>
    %c0_70 = arith.constant 0 : index
    %c0_71 = arith.constant 0 : index
    %137 = vector.load %arg25[%c0_70, %c0_71] : memref<16x1xf32, #tpu.memory_space<vmem>>, vector<16x1xf32>
    %138 = vector.extract_strided_slice %130 {offsets = [0, 0], sizes = [16, 8], strides = [1, 1]} : vector<16x16xf32> to vector<16x8xf32>
    %139 = vector.extract_strided_slice %129 {offsets = [0, 0], sizes = [8, 132], strides = [1, 1]} : vector<8x136xf32> to vector<8x132xf32>
    %cst_72 = arith.constant dense<0.000000e+00> : vector<16x132xf32>
    %140 = tpu.matmul %138, %139, %cst_72 {dimension_numbers = #tpu.dot_dimension_numbers<[1], [0], [0], [1], [0, 0, 1, 1], [], []>} : vector<16x8xf32>, vector<8x132xf32>, vector<16x132xf32> -> vector<16x132xf32>
    %141 = vector.extract_strided_slice %130 {offsets = [0, 8], sizes = [16, 8], strides = [1, 1]} : vector<16x16xf32> to vector<16x8xf32>
    %142 = vector.extract_strided_slice %129 {offsets = [0, 4], sizes = [8, 132], strides = [1, 1]} : vector<8x136xf32> to vector<8x132xf32>
    %cst_73 = arith.constant dense<0.000000e+00> : vector<16x132xf32>
    %143 = tpu.matmul %141, %142, %cst_73 {dimension_numbers = #tpu.dot_dimension_numbers<[1], [0], [0], [1], [0, 0, 1, 1], [], []>} : vector<16x8xf32>, vector<8x132xf32>, vector<16x132xf32> -> vector<16x132xf32>
    %144 = arith.addf %140, %143 : vector<16x132xf32>
    %145 = vector.broadcast %131 : vector<16x1xf32> to vector<16x132xf32>
    %146 = arith.mulf %144, %145 : vector<16x132xf32>
    %147 = vector.broadcast %132 : vector<16x1xf32> to vector<16x132xf32>
    %148 = arith.addf %146, %147 : vector<16x132xf32>
    %cst_74 = arith.constant 0.000000e+00 : f32
    %149 = vector.broadcast %cst_74 : f32 to vector<16x132xf32>
    %150 = arith.maximumf %148, %149 : vector<16x132xf32>
    %151 = vector.extract_strided_slice %2 {offsets = [0, 10], sizes = [1, 132], strides = [1, 1]} : vector<1x142xi32> to vector<1x132xi32>
    %152 = vector.broadcast %1 : i32 to vector<1x132xi32>
    %153 = arith.addi %151, %152 : vector<1x132xi32>
    %c0_i32_75 = arith.constant 0 : i32
    %154 = vector.broadcast %c0_i32_75 : i32 to vector<1x132xi32>
    %155 = arith.cmpi sge, %153, %154 : vector<1x132xi32>
    %cst_76 = arith.constant 0.000000e+00 : f32
    %156 = vector.shape_cast %155 : vector<1x132xi1> to vector<1x132xi1>
    %157 = vector.broadcast %156 : vector<1x132xi1> to vector<16x132xi1>
    %158 = vector.broadcast %cst_76 : f32 to vector<16x132xf32>
    %159 = arith.select %157, %150, %158 : vector<16x132xi1>, vector<16x132xf32>
    %160 = vector.extract_strided_slice %133 {offsets = [0, 0], sizes = [16, 16], strides = [1, 1]} : vector<16x32xf32> to vector<16x16xf32>
    %161 = vector.extract_strided_slice %159 {offsets = [0, 0], sizes = [16, 128], strides = [1, 1]} : vector<16x132xf32> to vector<16x128xf32>
    %cst_77 = arith.constant dense<0.000000e+00> : vector<16x128xf32>
    %162 = tpu.matmul %160, %161, %cst_77 {dimension_numbers = #tpu.dot_dimension_numbers<[1], [0], [0], [1], [0, 0, 1, 1], [], []>} : vector<16x16xf32>, vector<16x128xf32>, vector<16x128xf32> -> vector<16x128xf32>
    %163 = vector.extract_strided_slice %133 {offsets = [0, 16], sizes = [16, 16], strides = [1, 1]} : vector<16x32xf32> to vector<16x16xf32>
    %164 = vector.extract_strided_slice %159 {offsets = [0, 4], sizes = [16, 128], strides = [1, 1]} : vector<16x132xf32> to vector<16x128xf32>
    %cst_78 = arith.constant dense<0.000000e+00> : vector<16x128xf32>
    %165 = tpu.matmul %163, %164, %cst_78 {dimension_numbers = #tpu.dot_dimension_numbers<[1], [0], [0], [1], [0, 0, 1, 1], [], []>} : vector<16x16xf32>, vector<16x128xf32>, vector<16x128xf32> -> vector<16x128xf32>
    %166 = arith.addf %162, %165 : vector<16x128xf32>
    %167 = vector.broadcast %134 : vector<16x1xf32> to vector<16x128xf32>
    %168 = arith.mulf %166, %167 : vector<16x128xf32>
    %169 = vector.broadcast %135 : vector<16x1xf32> to vector<16x128xf32>
    %170 = arith.addf %168, %169 : vector<16x128xf32>
    %cst_79 = arith.constant 0.000000e+00 : f32
    %171 = vector.broadcast %cst_79 : f32 to vector<16x128xf32>
    %172 = arith.maximumf %170, %171 : vector<16x128xf32>
    %173 = vector.extract_strided_slice %129 {offsets = [0, 8], sizes = [8, 128], strides = [1, 1]} : vector<8x136xf32> to vector<8x128xf32>
    %cst_80 = arith.constant dense<0.000000e+00> : vector<16x128xf32>
    %174 = tpu.matmul %136, %173, %cst_80 {dimension_numbers = #tpu.dot_dimension_numbers<[1], [0], [0], [1], [0, 0, 1, 1], [], []>} : vector<16x8xf32>, vector<8x128xf32>, vector<16x128xf32> -> vector<16x128xf32>
    %175 = vector.broadcast %137 : vector<16x1xf32> to vector<16x128xf32>
    %176 = arith.addf %174, %175 : vector<16x128xf32>
    %177 = arith.addf %172, %176 : vector<16x128xf32>
    %cst_81 = arith.constant 0.000000e+00 : f32
    %178 = vector.broadcast %cst_81 : f32 to vector<16x128xf32>
    %179 = arith.maximumf %177, %178 : vector<16x128xf32>
    %c0_82 = arith.constant 0 : index
    %c0_83 = arith.constant 0 : index
    %c0_84 = arith.constant 0 : index
    %180 = vector.load %arg26[%c0_82, %c0_83, %c0_84] : memref<1x16x128xf32, #tpu.memory_space<vmem>>, vector<1x16x128xf32>
    %181 = vector.shape_cast %180 : vector<1x16x128xf32> to vector<16x128xf32>
    %182 = vector.shape_cast %179 : vector<16x128xf32> to vector<1x16x128xf32>
    tpu.vector_store %arg26[%c0_82, %c0_83, %c0_84], %182 {strides = array<i32>} : memref<1x16x128xf32, #tpu.memory_space<vmem>>, vector<1x16x128xf32>,
    return
  }
  func.func @transform_0(%arg0: i32, %arg1: i32) -> (i32, i32, i32) {
    %c0_i32 = arith.constant 0 : i32
    %c0_i32_0 = arith.constant 0 : i32
    return %arg0, %c0_i32, %arg1 : i32, i32, i32
  }
  func.func @transform_1(%arg0: i32, %arg1: i32) -> (i32, i32, i32) {
    %c1_i32 = arith.constant 1 : i32
    %0 = arith.muli %arg1, %c1_i32 : i32
    %c1_i32_0 = arith.constant 1 : i32
    %1 = arith.subi %0, %c1_i32_0 : i32
    %c0_i32 = arith.constant 0 : i32
    %2 = arith.maxsi %1, %c0_i32 : i32
    %c0_i32_1 = arith.constant 0 : i32
    %c0_i32_2 = arith.constant 0 : i32
    return %arg0, %c0_i32_1, %2 : i32, i32, i32
  }
  func.func @transform_2(%arg0: i32, %arg1: i32) -> (i32, i32) {
    %c0_i32 = arith.constant 0 : i32
    %c0_i32_0 = arith.constant 0 : i32
    %c0_i32_1 = arith.constant 0 : i32
    return %c0_i32, %c0_i32_0 : i32, i32
  }
  func.func @transform_3(%arg0: i32, %arg1: i32) -> (i32, i32) {
    %c0_i32 = arith.constant 0 : i32
    %c0_i32_0 = arith.constant 0 : i32
    %c0_i32_1 = arith.constant 0 : i32
    return %c0_i32, %c0_i32_0 : i32, i32
  }
  func.func @transform_4(%arg0: i32, %arg1: i32) -> (i32, i32) {
    %c0_i32 = arith.constant 0 : i32
    %c0_i32_0 = arith.constant 0 : i32
    %c0_i32_1 = arith.constant 0 : i32
    return %c0_i32, %c0_i32_0 : i32, i32
  }
  func.func @transform_5(%arg0: i32, %arg1: i32) -> (i32, i32) {
    %c0_i32 = arith.constant 0 : i32
    %c0_i32_0 = arith.constant 0 : i32
    %c0_i32_1 = arith.constant 0 : i32
    return %c0_i32, %c0_i32_0 : i32, i32
  }
  func.func @transform_6(%arg0: i32, %arg1: i32) -> (i32, i32) {
    %c0_i32 = arith.constant 0 : i32
    %c0_i32_0 = arith.constant 0 : i32
    %c0_i32_1 = arith.constant 0 : i32
    return %c0_i32, %c0_i32_0 : i32, i32
  }
  func.func @transform_7(%arg0: i32, %arg1: i32) -> (i32, i32) {
    %c0_i32 = arith.constant 0 : i32
    %c0_i32_0 = arith.constant 0 : i32
    %c0_i32_1 = arith.constant 0 : i32
    return %c0_i32, %c0_i32_0 : i32, i32
  }
  func.func @transform_8(%arg0: i32, %arg1: i32) -> (i32, i32) {
    %c0_i32 = arith.constant 0 : i32
    %c0_i32_0 = arith.constant 0 : i32
    %c0_i32_1 = arith.constant 0 : i32
    return %c0_i32, %c0_i32_0 : i32, i32
  }
  func.func @transform_9(%arg0: i32, %arg1: i32) -> (i32, i32) {
    %c0_i32 = arith.constant 0 : i32
    %c0_i32_0 = arith.constant 0 : i32
    %c0_i32_1 = arith.constant 0 : i32
    return %c0_i32, %c0_i32_0 : i32, i32
  }
  func.func @transform_10(%arg0: i32, %arg1: i32) -> (i32, i32) {
    %c0_i32 = arith.constant 0 : i32
    %c0_i32_0 = arith.constant 0 : i32
    %c0_i32_1 = arith.constant 0 : i32
    return %c0_i32, %c0_i32_0 : i32, i32
  }
  func.func @transform_11(%arg0: i32, %arg1: i32) -> (i32, i32) {
    %c0_i32 = arith.constant 0 : i32
    %c0_i32_0 = arith.constant 0 : i32
    %c0_i32_1 = arith.constant 0 : i32
    return %c0_i32, %c0_i32_0 : i32, i32
  }
  func.func @transform_12(%arg0: i32, %arg1: i32) -> (i32, i32) {
    %c0_i32 = arith.constant 0 : i32
    %c0_i32_0 = arith.constant 0 : i32
    %c0_i32_1 = arith.constant 0 : i32
    return %c0_i32, %c0_i32_0 : i32, i32
  }
  func.func @transform_13(%arg0: i32, %arg1: i32) -> (i32, i32) {
    %c0_i32 = arith.constant 0 : i32
    %c0_i32_0 = arith.constant 0 : i32
    %c0_i32_1 = arith.constant 0 : i32
    return %c0_i32, %c0_i32_0 : i32, i32
  }
  func.func @transform_14(%arg0: i32, %arg1: i32) -> (i32, i32) {
    %c0_i32 = arith.constant 0 : i32
    %c0_i32_0 = arith.constant 0 : i32
    %c0_i32_1 = arith.constant 0 : i32
    return %c0_i32, %c0_i32_0 : i32, i32
  }
  func.func @transform_15(%arg0: i32, %arg1: i32) -> (i32, i32) {
    %c0_i32 = arith.constant 0 : i32
    %c0_i32_0 = arith.constant 0 : i32
    %c0_i32_1 = arith.constant 0 : i32
    return %c0_i32, %c0_i32_0 : i32, i32
  }
  func.func @transform_16(%arg0: i32, %arg1: i32) -> (i32, i32) {
    %c0_i32 = arith.constant 0 : i32
    %c0_i32_0 = arith.constant 0 : i32
    %c0_i32_1 = arith.constant 0 : i32
    return %c0_i32, %c0_i32_0 : i32, i32
  }
  func.func @transform_17(%arg0: i32, %arg1: i32) -> (i32, i32) {
    %c0_i32 = arith.constant 0 : i32
    %c0_i32_0 = arith.constant 0 : i32
    %c0_i32_1 = arith.constant 0 : i32
    return %c0_i32, %c0_i32_0 : i32, i32
  }
  func.func @transform_18(%arg0: i32, %arg1: i32) -> (i32, i32) {
    %c0_i32 = arith.constant 0 : i32
    %c0_i32_0 = arith.constant 0 : i32
    %c0_i32_1 = arith.constant 0 : i32
    return %c0_i32, %c0_i32_0 : i32, i32
  }
  func.func @transform_19(%arg0: i32, %arg1: i32) -> (i32, i32) {
    %c0_i32 = arith.constant 0 : i32
    %c0_i32_0 = arith.constant 0 : i32
    %c0_i32_1 = arith.constant 0 : i32
    return %c0_i32, %c0_i32_0 : i32, i32
  }
  func.func @transform_20(%arg0: i32, %arg1: i32) -> (i32, i32) {
    %c0_i32 = arith.constant 0 : i32
    %c0_i32_0 = arith.constant 0 : i32
    %c0_i32_1 = arith.constant 0 : i32
    return %c0_i32, %c0_i32_0 : i32, i32
  }
  func.func @transform_21(%arg0: i32, %arg1: i32) -> (i32, i32) {
    %c0_i32 = arith.constant 0 : i32
    %c0_i32_0 = arith.constant 0 : i32
    %c0_i32_1 = arith.constant 0 : i32
    return %c0_i32, %c0_i32_0 : i32, i32
  }
  func.func @transform_22(%arg0: i32, %arg1: i32) -> (i32, i32) {
    %c0_i32 = arith.constant 0 : i32
    %c0_i32_0 = arith.constant 0 : i32
    %c0_i32_1 = arith.constant 0 : i32
    return %c0_i32, %c0_i32_0 : i32, i32
  }
  func.func @transform_23(%arg0: i32, %arg1: i32) -> (i32, i32) {
    %c0_i32 = arith.constant 0 : i32
    %c0_i32_0 = arith.constant 0 : i32
    %c0_i32_1 = arith.constant 0 : i32
    return %c0_i32, %c0_i32_0 : i32, i32
  }
  func.func @transform_24(%arg0: i32, %arg1: i32) -> (i32, i32, i32) {
    %c0_i32 = arith.constant 0 : i32
    %c0_i32_0 = arith.constant 0 : i32
    return %arg0, %c0_i32, %arg1 : i32, i32, i32
  }
}

</mosaic_0001>

<bundles_post_ra>
// kernel: tpu_custom_call.1
= control target key start
LH: loop header
LB: loop body
LE: loop exit
PB: predicated region body
PF: predicated region fallthrough
CT: control target
= control target key end

     0   :  { %s3210_s0 = inlined_call_operand.vmem [shape: f32[2,4,256], index: 0, kind: input, shape index: {}]   ;;  %s3211_s1 = inlined_call_operand.vmem [shape: f32[2,4,256], index: 1, kind: input, shape index: {}]   ;;  %s3212_s2 = inlined_call_operand.vmem [shape: f32[8,8], index: 2, kind: input, shape index: {}]   ;;  %s3213_s3 = inlined_call_operand.vmem [shape: f32[8,1], index: 3, kind: input, shape index: {}]   ;;  %s3214_s4 = inlined_call_operand.vmem [shape: f32[8,1], index: 4, kind: input, shape index: {}]   ;;  %s3215_s5 = inlined_call_operand.vmem [shape: f32[8,16], index: 5, kind: input, shape index: {}]   ;;  %s3216_s6 = inlined_call_operand.vmem [shape: f32[8,1], index: 6, kind: input, shape index: {}]   ;;  %s3217_s7 = inlined_call_operand.vmem [shape: f32[8,1], index: 7, kind: input, shape index: {}]   ;;  %s3218_s8 = inlined_call_operand.vmem [shape: f32[8,4], index: 8, kind: input, shape index: {}]   ;;  %s3219_s9 = inlined_call_operand.vmem [shape: f32[8,1], index: 9, kind: input, shape index: {}]   ;;  %s3220_s10 = inlined_call_operand.vmem [shape: f32[8,16], index: 10, kind: input, shape index: {}]   ;;  %s3221_s11 = inlined_call_operand.vmem [shape: f32[8,1], index: 11, kind: input, shape index: {}]   ;;  %s3222_s12 = inlined_call_operand.vmem [shape: f32[8,1], index: 12, kind: input, shape index: {}]   ;;  %s3223_s13 = inlined_call_operand.vmem [shape: f32[8,16], index: 13, kind: input, shape index: {}]   ;;  %s3224_s14 = inlined_call_operand.vmem [shape: f32[8,1], index: 14, kind: input, shape index: {}]   ;;  %s3225_s15 = inlined_call_operand.vmem [shape: f32[8,1], index: 15, kind: input, shape index: {}]   ;;  %s3226_s16 = inlined_call_operand.vmem [shape: f32[16,16], index: 16, kind: input, shape index: {}]   ;;  %s3227_s17 = inlined_call_operand.vmem [shape: f32[16,1], index: 17, kind: input, shape index: {}]   ;;  %s3228_s18 = inlined_call_operand.vmem [shape: f32[16,1], index: 18, kind: input, shape index: {}]   ;;  %s3229_s19 = inlined_call_operand.vmem [shape: f32[16,32], index: 19, kind: input, shape index: {}]   ;;  %s3230_s20 = inlined_call_operand.vmem [shape: f32[16,1], index: 20, kind: input, shape index: {}]   ;;  %s3231_s21 = inlined_call_operand.vmem [shape: f32[16,1], index: 21, kind: input, shape index: {}]   ;;  %s3232_s22 = inlined_call_operand.vmem [shape: f32[16,8], index: 22, kind: input, shape index: {}]   ;;  %s3233_s23 = inlined_call_operand.vmem [shape: f32[16,1], index: 23, kind: input, shape index: {}]   ;;  %s3234_s24 = inlined_call_operand.hbm [shape: f32[2,16,256], index: 24, kind: output, shape index: {}]  }
   0x1   :  { %3253 = sst [smem:[#allocation17_spill]] %s3210_s0 }
   0x2   :  { %3254 = sst [smem:[#allocation18_spill]] %s3211_s1 }
   0x3   :  { %3255 = sst [smem:[#allocation19_spill]] %s3212_s2 }
   0x4   :  { %3256 = sst [smem:[#allocation20_spill]] %s3213_s3 }
   0x5   :  { %3257 = sst [smem:[#allocation21_spill]] %s3214_s4 }
   0x6   :  { %3258 = sst [smem:[#allocation22_spill]] %s3215_s5 }
   0x7   :  { %3259 = sst [smem:[#allocation23_spill]] %s3216_s6 }
   0x8   :  { %3260 = sst [smem:[#allocation24_spill]] %s3217_s7 }
   0x9   :  { %3261 = sst [smem:[#allocation25_spill]] %s3218_s8 }
   0xa   :  { %3262 = sst [smem:[#allocation26_spill]] %s3231_s21 }
   0xb   :  { %3263 = sst [smem:[#allocation27_spill]] %s3232_s22 }
   0xc   :  { %3264 = sst [smem:[#allocation28_spill]] %s3233_s23 }
   0xd   :  { %3265 = sst [smem:[#allocation29_spill]] %s3234_s24 }
   0xe   :  { %29 = vsyncpa [#allocation3], 0 }
   0xf   :  { %31 = vsyncpa [#allocation3 + $0x1], 0  ;;  %s2841_s5 = smov 0   ;;  %s2843_s26 = smov 0  }
  0x10   :  { %s2845_s27 = smov 0   ;;  %s2847_s28 = smov 0  }
  0x11   :  { %s2849_s6 = smov 0   ;;  %s2851_s2 = smov 0  }
  0x12   :  { %s2853_s29 = smov 0   ;;  %s2855_s0 = smov 0  }
  0x13 LB: > { %3266 = sst [smem:[#allocation5_spill]] %s2666_s5  ;;  %s2428_s7 = sadd.s32 4294967295, %s2694_s0   ;;  %s2694_s0 = sphi %s2855_s0, %s37_s0   ;;  %s2690_s29 = sphi %s2853_s29, %s3306_s29   ;;  %s2686_s2 = sphi %s2851_s2, %s3305_s2   ;;  %s2682_s6 = sphi %s2849_s6, %s3304_s6   ;;  %s2678_s28 = sphi %s2847_s28, %s3303_s28   ;;  %s2674_s27 = sphi %s2845_s27, %s3302_s27   ;;  %s2670_s26 = sphi %s2843_s26, %s3301_s26   ;;  %s2666_s5 = sphi %s2841_s5, %s3300_s5  }
  0x14   : > { %3267 = sst [smem:[#allocation6_spill]] %s2670_s26  ;;  %s2429_s30 = sadd.s32 4294967294, %s2694_s0  }
  0x15   : > { %3268 = sst [smem:[#allocation7_spill]] %s2674_s27  ;;  %s46_s3 = sadd.s32 1, %s2686_s2 }
  0x16   : > { %3269 = sst [smem:[#allocation8_spill]] %s2682_s6  ;;  %p47_p0 = scmp.ge.s32.totalorder %s46_s3, 2 }
  0x17   : > { %3270 = sst [smem:[#allocation9_spill]] %s2686_s2  ;;  %s49_s25 = sadd.s32 1, %s2690_s29 }
  0x18   : > { %3271 = sst [smem:[#allocation10_spill]] %s2690_s29  ;;  %p592_p1 = scmp.ne.s32.totalorder %s2674_s27, %s2670_s26 }
  0x19   : > { %3272 = sst [smem:[#allocation11_spill]] %s2694_s0  ;;  %p593_p2 = scmp.eq.s32.totalorder %s2428_s7, 3 }
  0x1a   : > { %s3308_s3 = smov (%p47_p0, %s46_s3), 0  ;;  %s3310_s25 = smov (!%p47_p0, %s49_s25), %s2690_s29 }
  0x1b   : > { %3273 = sst [smem:[#allocation12_spill]] %s3308_s3  ;;  %s578_s8 = ssub.s32 %s2686_s2, %s3308_s3 }
  0x1c   : > { %p2892_p3 = por %p593_p2, %p592_p1  ;;  %p51_p4 = scmp.ge.s32.totalorder %s3310_s25, 2 }
  0x1d   : > { %p598_p5 = scmp.ne.s32.totalorder %s2670_s26, %s2666_s5  ;;  %p599_p6 = scmp.eq.s32.totalorder %s2429_s30, 3 }
  0x1e   : > { %s3274_s4 = scalar_select %p2892_p3, 1, 0 }
  0x1f   : > { %p2434_p7 = scmp.ge.s32.totalorder %s2694_s0, 1  ;;  %s3312_s25 = smov (%p51_p4, %s3310_s25), 0 }
  0x20   : > { %3275 = sst [smem:[#allocation13_spill]] %s3274_s4  ;;  %p2901_p8 = por %p599_p6, %p598_p5 }
  0x21   : > { %3276 = sst [smem:[#allocation14_spill]] %s3312_s25  ;;  %p711_p9 = scmp.lt.s32.totalorder %s2694_s0, 5 }
  0x22   : > { %s3277_s1 = scalar_select %p2901_p8, 1, 0 }
  0x23   : > { %s577_s7 = ssub.s32 %s2690_s29, %s3312_s25  ;;  %s582_s24 = sadd.s32 1, %s2674_s27 }
  0x24   : > { %3278 = sst [smem:[#allocation15_spill]] %s3277_s1  ;;  %s579_s22 = sor.u32 %s578_s8, %s577_s7 }
  0x25   : > { %p712_p10 = pnand %p2434_p7, %p711_p9  ;;  %p580_p11 = scmp.eq.s32.totalorder %s579_s22, 0 }
  0x26   : > { %p791_p12 = scmp.lt.s32.totalorder (!%p712_p10), %s2682_s6, 1  ;;  %s2438_s30 = sadd.s32 (!%p712_p10), 4294967295, %s2678_s28 }
  0x27   : > { %s2910_s3 = scalar_select %p580_p11, %s2674_s27, %s582_s24  }
  0x28   : > { %715 = sbr.rel (%p712_p10) target bundleno = 2751 (0xabf), region = 116  ;;  %p800_p13 = scmp.gt.s32.totalorder (!%p712_p10), %s2438_s30, 0 }
  0x29   : > { %3279 = sst [smem:[#allocation16_spill]] %s2910_s3  ;;  %p2439_p0 = scmp.lt.s32.totalorder (!%p712_p10), %s2438_s30, 1 }
  0x2a   : > { %p793_p1 = scmp.lt.s32.totalorder (!%p712_p10), %s2678_s28, 1  ;;  %s3280_s25 = sld [smem:[#allocation18_spill]] (!%p712_p10) }
  0x2b   : > { %s2696_s27 = smov (!%p712_p10), 14   ;;  %s3282_s21 = sld [smem:[#allocation19_spill]] (!%p712_p10) }
  0x2c   : > { %s2700_s26 = smov (!%p712_p10), 127   ;;  %s2702_s4 = smov (!%p712_p10), 126  }
  0x2d   : > { %s792_s2 = scalar_select %p791_p12, %s2682_s6, 1  ;;  %v815_v3 = vlaneseq  ;;  %v2698_v6 = vmov 0.0   ;;  %v2699_v12 = vmov 0   ;;  %vm828_vm0 = vcmask 113664   ;;  %v848_v44 = vld [vmem:[%s3219_s9] sm:$0xff] }
  0x2e   : > { %s3314_s30 = smov (!%p800_p13, %s2438_s30), 0  ;;  %s3281_s6 = sld [smem:[#allocation17_spill]]  ;;  %1009 = vmatprep.mubr.f32.mxu1 %v2698_v6  ;;  %932 = vmatprep.mubr.f32.mxu0 %v2698_v6  ;;  %vm863_vm2 = vcmask 1043456   ;;  %vm860_vm4 = vcmask 31744   ;;  %vm858_vm5 = vcmask 1039360   ;;  %vm1038_vm6 = vcmask 7168  }
  0x2f   : > { %s2436_s1 = sshll.u32 %s792_s2, 1  ;;  %s3316_s30 = smov (!%p2439_p0, %s3314_s30), 1  ;;  %v816_v4 = vand.u32 127, %v815_v3  ;;  %2600 = vset.pattern.permute.xlu1 %v2699_v12  ;;  %2601 = vset.pattern.permute.xlu0 %v2699_v12  ;;  %vm1053_vm7 = vcmask 1031168   ;;  %vm1057_vm8 = vcmask 64512   ;;  %vm1325_vm9 = vcmask 15360  }
  0x30   : > { %s807_s8 = sadd.s32 %s3316_s30, %s2436_s1  ;;  %s3285_s24 = sld [smem:[#allocation22_spill]]  ;;  %vm1346_vm10 = vcmask 1014784   ;;  %vm1539_vm11 = vcmask 998400   ;;  %vm1729_vm12 = vcmask 48128   ;;  %vm1763_vm13 = vcmask 965632  }
  0x31   : > { %s2445_s22 = sshll.u32 %s807_s8, 2  ;;  %v841_v2 = vld [vmem:[%s3282_s21] sm:$0xff]  ;;  %s2697_s8 = smov 124   ;;  %v817_v5 = vadd.s32 128, %v816_v4  ;;  %vm1980_vm14 = vcmask 80896   ;;  %vm2014_vm15 = vcmask 130048  }
  0x32   : > { %s809_s29 = scalar_lea.vmem %s3280_s25, %s2445_s22  ;;  %s2703_s7 = smov 120  }
  0x33   : > { %v819_v0 = vld [vmem:[%s809_s29] sm:$0xf]  ;;  %s794_s3 = scalar_select %p793_p1, %s2678_s28, 1 }
  0x34   : > { %821 = vrot.lane.b32.xlu0 %v819_v0, %s2696_s27  ;;  %s2446_s29 = sshll.u32 %s2678_s28, 7  ;;  %s3293_s2 = sld [smem:[#allocation8_spill]] }
  0x35   : > { %s796_s5 = sadd.s32 %s2436_s1, %s794_s3  ;;  %s2447_s25 = sadd.s32 4294967282, %s2446_s29 }
  0x36   : > { %s2437_s0 = sshll.u32 %s796_s5, 2  ;;  %v830_v7 = vstv %s2447_s25  ;;  %s3283_s5 = sld [smem:[#allocation21_spill]]  ;;  %v844_v41 = vld [vmem:[%s3285_s24] sm:$0xff] }
  0x37   : > { %s798_s23 = scalar_lea.vmem %s3281_s6, %s2437_s0  ;;  %v2930_v8 = vadd.s32 %v830_v7, %v817_v5  ;;  %v2932_v10 = vadd.s32 %v830_v7, %v816_v4  ;;  %s3284_s0 = sld [smem:[#allocation20_spill]] }
  0x38   : > { %v818_v1 = vld [vmem:[%s798_s23] sm:$0xf]  ;;  %s2701_s3 = smov 1   ;;  %s3286_s29 = sld [smem:[#allocation24_spill]] }
  0x39   : > { %825 = vrot.lane.b32.xlu0 %v818_v1, %s2696_s27  ;;  %vm834_vm1 = vcmp.ge.s32.totalorder %v2930_v8, 0  ;;  %vm833_vm3 = vcmp.ge.s32.totalorder %v2932_v10, 0  ;;  %s3287_s23 = sld [smem:[#allocation23_spill]]  ;;  %s2706_s25 = smov 122   ;;  %v1743_v10 = vld [vmem:[%s3230_s20] sm:$0xff]  ;;  %v1744_v8 = vld [vmem:[%s3230_s20 + $0x8] sm:$0xff] }
  0x3a   : > { %s2710_s27 = smov 114   ;;  %s3292_s1 = sld [smem:[#allocation6_spill]] }
  0x3b   : > { %s3295_s6 = sld [smem:[#allocation29_spill]] }
  0x3c   : > { %v843_v11 = vld [vmem:[%s3283_s5] sm:$0xff] }
  0x3d   : > { %850 = vrot.lane.b32.xlu0 %v841_v2, %s2697_s8  ;;  %v842_v17 = vld [vmem:[%s3284_s0] sm:$0xff]  ;;  %s3288_s0 = sld [smem:[#allocation25_spill]] }
  0x3e   : > { %v846_v42 = vld [vmem:[%s3286_s29] sm:$0xff]  ;;  %s2474_s29 = sshll.u32 %s3293_s2, 2 }
  0x3f   : > { %v845_v43 = vld [vmem:[%s3287_s23] sm:$0xff]  ;;  %s2326_s21 = sadd.s32 %s2678_s28, %s2474_s29 }
  0x40   : > { %s788_s30 = sand.u32 1, %s3292_s1  }
  0x41   : > { %1025 = vperm.xlu0 %2601, %v843_v11   ;;  %s3159_s24 = scalar_lea.sflag [#allocation3], %s788_s30 }
  0x43   : > { %v847_v54 = vld [vmem:[%s3288_s0] sm:$0xff]  ;;  %s2708_s0 = smov 118  }
  0xa6   : > { %v822_v9 = vpop.permute.xlu0 %821 }
  0xab   : > { %v826_v13 = vpop.permute.xlu0 %825 }
  0xac   : > { %v829_v14 = vsel %vm828_vm0, %v822_v9, %v826_v13  ;;  %v840_v15 = vsel %vm834_vm1, %v826_v13, 0.0  ;;  %vm2009_vm0 = vcmask 932864  }
  0xad   : > { %2451 = vmatprep.subr.msk.mxu1 %vm863_vm2, %v840_v15  ;;  %v839_v16 = vsel %vm833_vm3, %v829_v14, 0.0 }
  0xae   : > { %854 = vrot.lane.b32.xlu1 %v839_v16, %s2700_s26  ;;  %2452 = vmatpush1.msk.msra.mxu1 %vm863_vm2, %v839_v16 }
  0xaf   : > { %2453 = vmatmul.mubr.msk.f32.vlgmr.msra.gmra.mxu1 %vm860_vm4, %v841_v2  ;;  %v851_v20 = vpop.permute.xlu0 %850 }
  0xb0   : > { %1204 = vmatprep.mubr.f32.mxu1 %v2698_v6 }
  0xb2   : > { %856 = vrot.lane.b32.xlu1 %v840_v15, %s2700_s26 }
  0xb6   : > { %1018 = vperm.xlu1 %2600, %v842_v17  }
  0xbc   : > { %v1026_v26 = vpop.permute.xlu0 %1025 }
 0x120   : > { %v855_v18 = vpop.permute.xlu1 %854 }
 0x124   : > { %v857_v19 = vpop.permute.xlu1 %856 }
 0x125   : > { %2448 = vmatprep.subr.msk.mxu0 %vm863_vm2, %v857_v19  ;;  %v859_v21 = vsel %vm858_vm5, %v855_v18, %v857_v19 }
 0x126   : > { %2449 = vmatpush1.msk.msra.mxu0 %vm863_vm2, %v859_v21 }
 0x127   : > { %2450 = vmatmul.mubr.msk.f32.vlgmr.msra.gmra.mxu0 %vm860_vm4, %v851_v20 }
 0x128   : > { %1124 = vmatprep.mubr.f32.mxu0 %v2698_v6 }
 0x131   : > { %v1019_v24 = vpop.permute.xlu1 %1018 }
 0x16f   : > { %v1011_v22 = vpop.f32.mrf.mxu1 }
 0x171   : > { %v1013_v27 = vpop.f32.mrf.mxu1 }
 0x1e7   : > { %v934_v23 = vpop.f32.mrf.mxu0 }
 0x1e8   : > { %v1012_v25 = vadd.f32 %v1011_v22, %v934_v23  ;;  %v1331_v23 = vld [vmem:[%s3220_s10] sm:$0xff] }
 0x1e9   : > { %v936_v28 = vpop.f32.mrf.mxu0 }
 0x1ea   : > { %v1021_v29 = vmul.f32 %v1019_v24, %v1012_v25  ;;  %v1014_v30 = vadd.f32 %v1013_v27, %v936_v28  ;;  %v1333_v25 = vld [vmem:[%s3222_s12] sm:$0xff] }
 0x1ec   : > { %v1022_v31 = vmul.f32 %v1019_v24, %v1014_v30  ;;  %v1028_v32 = vadd.f32 %v1026_v26, %v1021_v29  ;;  %v1332_v24 = vld [vmem:[%s3221_s11] sm:$0xff] }
 0x1ee   : > { %v1029_v33 = vadd.f32 %v1026_v26, %v1022_v31  ;;  %v1030_v34 = vmax.f32 %v1028_v32, 0.0 }
 0x1f0   : > { %1034 = vrot.lane.b32.xlu1 %v1030_v34, %s2701_s3  ;;  %v1031_v35 = vmax.f32 %v1029_v33, 0.0 }
 0x1f4   : > { %1036 = vrot.lane.b32.xlu1 %v1031_v35, %s2701_s3  ;;  %s2704_s3 = smov 2  }
 0x262   : > { %v1035_v36 = vpop.permute.xlu1 %1034 }
 0x263   : > { %v1042_v37 = vsel %vm833_vm3, %v1035_v36, 0.0 }
 0x264   : > { %1049 = vrot.lane.b32.xlu0 %v1042_v37, %s2702_s4 }
 0x266   : > { %v1037_v38 = vpop.permute.xlu1 %1036 }
 0x267   : > { %v1039_v39 = vsel %vm1038_vm6, %v1035_v36, %v1037_v38 }
 0x268   : > { %1131 = vrot.lane.b32.xlu0 %v1042_v37, %s2700_s26  ;;  %v1043_v40 = vsel %vm834_vm1, %v1039_v39, 0.0 }
 0x269   : > { %1051 = vrot.lane.b32.xlu1 %v1043_v40, %s2702_s4 }
 0x26c   : > { %1045 = vrot.lane.b32.xlu0 %v844_v41, %s2703_s7 }
 0x26d   : > { %1133 = vrot.lane.b32.xlu1 %v1043_v40, %s2700_s26 }
 0x270   : > { %1234 = vrot.lane.b32.xlu0 %v840_v15, %s2702_s4 }
 0x271   : > { %1232 = vrot.lane.b32.xlu1 %v839_v16, %s2702_s4 }
 0x274   : > { %1220 = vperm.xlu0 %2601, %v846_v42  }
 0x275   : > { %1213 = vperm.xlu1 %2600, %v845_v43  }
 0x279   : > { %1229 = vperm.xlu1 %2600, %v848_v44  }
 0x2d6   : > { %v1050_v45 = vpop.permute.xlu0 %1049 }
 0x2da   : > { %v1132_v46 = vpop.permute.xlu0 %1131 }
 0x2db   : > { %v1052_v47 = vpop.permute.xlu1 %1051 }
 0x2dc   : > { %v1054_v48 = vsel %vm1053_vm7, %v1050_v45, %v1052_v47  ;;  %1090 = vmatprep.subr.mxu0 %v1052_v47 }
 0x2dd   : > { %1091 = vmatpush1.msra.mxu0 %v1054_v48 }
 0x2de   : > { %v1046_v49 = vpop.permute.xlu0 %1045 }
 0x2df   : > { %v1134_v50 = vpop.permute.xlu1 %1133  ;;  %2454 = vmatmul.mubr.msk.f32.vlgmr.msra.gmra.mxu0 %vm1057_vm8, %v1046_v49 }
 0x2e0   : > { %v1135_v51 = vsel %vm858_vm5, %v1132_v46, %v1134_v50  ;;  %1170 = vmatprep.subr.mxu1 %v1134_v50  ;;  %1308 = vmatprep.mubr.f32.mxu0 %v2698_v6 }
 0x2e1   : > { %1171 = vmatpush1.msra.mxu1 %v1135_v51 }
 0x2e2   : > { %v1235_v52 = vpop.permute.xlu0 %1234  ;;  %2455 = vmatmul.mubr.msk.f32.vlgmr.msra.gmra.mxu1 %vm1057_vm8, %v844_v41 }
 0x2e3   : > { %2456 = vmatprep.subr.msk.mxu0 %vm863_vm2, %v1235_v52  ;;  %v1233_v53 = vpop.permute.xlu1 %1232  ;;  %1416 = vmatprep.mubr.f32.mxu1 %v2698_v6 }
 0x2e4   : > { %v1236_v55 = vsel %vm1053_vm7, %v1233_v53, %v1235_v52  ;;  %v1334_v52 = vld [vmem:[%s3223_s13] sm:$0xff] }
 0x2e5   : > { %2457 = vmatpush1.msk.msra.mxu0 %vm863_vm2, %v1236_v55  ;;  %v1335_v53 = vld [vmem:[%s3224_s14] sm:$0xff] }
 0x2e6   : > { %2458 = vmatmul.mubr.msk.f32.vlgmr.msra.gmra.mxu0 %vm860_vm4, %v847_v54  ;;  %v1336_v54 = vld [vmem:[%s3225_s15] sm:$0xff] }
 0x2e7   : > { %1496 = vmatprep.mubr.f32.mxu0 %v2698_v6 }
 0x2ef   : > { %v1221_v0 = vpop.permute.xlu0 %1220 }
 0x2f0   : > { %v1214_v57 = vpop.permute.xlu1 %1213 }
 0x2f4   : > { %v1230_v4 = vpop.permute.xlu1 %1229 }
 0x39f   : > { %v1126_v56 = vpop.f32.mrf.mxu0 }
 0x3a1   : > { %v1128_v60 = vpop.f32.mrf.mxu0 }
 0x3a2   : > { %v1206_v58 = vpop.f32.mrf.mxu1 }
 0x3a3   : > { %v1207_v59 = vadd.f32 %v1206_v58, %v1126_v56 }
 0x3a4   : > { %v1208_v61 = vpop.f32.mrf.mxu1 }
 0x3a5   : > { %v1216_v62 = vmul.f32 %v1214_v57, %v1207_v59  ;;  %v1209_v63 = vadd.f32 %v1208_v61, %v1128_v60 }
 0x3a6   : > { %v1310_v1 = vpop.f32.mrf.mxu0 }
 0x3a7   : > { %v1223_v2 = vadd.f32 %v1221_v0, %v1216_v62  ;;  %v1217_v3 = vmul.f32 %v1214_v57, %v1209_v63  ;;  %v1311_v11 = vadd.f32 %v1310_v1, %v1230_v4 }
 0x3a8   : > { %v1312_v5 = vpop.f32.mrf.mxu0 }
 0x3a9   : > { %v1224_v7 = vadd.f32 %v1221_v0, %v1217_v3  ;;  %v1225_v9 = vmax.f32 %v1223_v2, 0.0  ;;  %v1313_v14 = vadd.f32 %v1312_v5, %v1230_v4 }
 0x3ab   : > { %v1315_v12 = vadd.f32 %v1311_v11, %v1225_v9  ;;  %v1226_v13 = vmax.f32 %v1224_v7, 0.0 }
 0x3ad   : > { %v1317_v15 = vmax.f32 %v1315_v12, 0.0  ;;  %v1316_v16 = vadd.f32 %v1313_v14, %v1226_v13 }
 0x3af   : > { %v1318_v17 = vmax.f32 %v1316_v16, 0.0  ;;  %1321 = vrot.lane.b32.xlu0 %v1317_v15, %s2704_s3 }
 0x3b1   : > { %1323 = vrot.lane.b32.xlu1 %v1318_v17, %s2704_s3  ;;  %s3291_s3 = sld [smem:[#allocation27_spill]] }
 0x421   : > { %v1322_v18 = vpop.permute.xlu0 %1321 }
 0x422   : > { %v1329_v19 = vsel %vm833_vm3, %v1322_v18, 0.0 }
 0x423   : > { %v1324_v20 = vpop.permute.xlu1 %1323  ;;  %1342 = vrot.lane.b32.xlu0 %v1329_v19, %s2697_s8 }
 0x424   : > { %v1326_v21 = vsel %vm1325_vm9, %v1322_v18, %v1324_v20 }
 0x425   : > { %v1330_v22 = vsel %vm834_vm1, %v1326_v21, 0.0 }
 0x426   : > { %1344 = vrot.lane.b32.xlu1 %v1330_v22, %s2697_s8 }
 0x427   : > { %1423 = vrot.lane.b32.xlu0 %v1329_v19, %s2702_s4 }
 0x42a   : > { %1425 = vrot.lane.b32.xlu1 %v1330_v22, %s2702_s4  ;;  %s2705_s4 = smov 4  }
 0x42b   : > { %1338 = vrot.lane.b32.xlu0 %v1331_v23, %s2703_s7 }
 0x42e   : > { %1505 = vperm.xlu1 %2600, %v1332_v24  }
 0x42f   : > { %1512 = vperm.xlu0 %2601, %v1333_v25  }
 0x495   : > { %v1343_v26 = vpop.permute.xlu0 %1342 }
 0x498   : > { %v1345_v27 = vpop.permute.xlu1 %1344 }
 0x499   : > { %v1347_v28 = vsel %vm1346_vm10, %v1343_v26, %v1345_v27  ;;  %v1424_v29 = vpop.permute.xlu0 %1423  ;;  %1382 = vmatprep.subr.mxu1 %v1345_v27  ;;  %v1735_v27 = vld [vmem:[%s3226_s16] sm:$0xff] }
 0x49a   : > { %1383 = vmatpush1.msra.mxu1 %v1347_v28  ;;  %v1736_v28 = vld [vmem:[%s3226_s16 + $0x8] sm:$0xff] }
 0x49c   : > { %v1426_v30 = vpop.permute.xlu1 %1425 }
 0x49d   : > { %v1427_v31 = vsel %vm1053_vm7, %v1424_v29, %v1426_v30  ;;  %v1339_v32 = vpop.permute.xlu0 %1338  ;;  %1462 = vmatprep.subr.mxu0 %v1426_v30  ;;  %v1738_v29 = vld [vmem:[%s3227_s17 + $0x8] sm:$0xff]  ;;  %v1737_v30 = vld [vmem:[%s3227_s17] sm:$0xff] }
 0x49e   : > { %2459 = vmatmul.mubr.msk.f32.vlgmr.msra.gmra.mxu1 %vm1057_vm8, %v1339_v32  ;;  %1463 = vmatpush1.msra.mxu0 %v1427_v31  ;;  %v1740_v31 = vld [vmem:[%s3228_s18 + $0x8] sm:$0xff]  ;;  %v1739_v32 = vld [vmem:[%s3228_s18] sm:$0xff] }
 0x49f   : > { %2460 = vmatmul.mubr.msk.f32.vlgmr.msra.gmra.mxu0 %vm1057_vm8, %v1331_v23  ;;  %1609 = vmatprep.mubr.f32.mxu1 %v2698_v6 }
 0x4a0   : > { %1689 = vmatprep.mubr.f32.mxu0 %v2698_v6 }
 0x4a9   : > { %v1506_v37 = vpop.permute.xlu1 %1505 }
 0x4aa   : > { %v1513_v41 = vpop.permute.xlu0 %1512 }
 0x55e   : > { %v1418_v33 = vpop.f32.mrf.mxu1 }
 0x55f   : > { %v1498_v34 = vpop.f32.mrf.mxu0 }
 0x560   : > { %v1499_v35 = vadd.f32 %v1498_v34, %v1418_v33  ;;  %v1420_v36 = vpop.f32.mrf.mxu1 }
 0x561   : > { %v1500_v38 = vpop.f32.mrf.mxu0 }
 0x562   : > { %v1508_v39 = vmul.f32 %v1506_v37, %v1499_v35  ;;  %v1501_v40 = vadd.f32 %v1500_v38, %v1420_v36 }
 0x564   : > { %v1509_v42 = vmul.f32 %v1506_v37, %v1501_v40  ;;  %v1515_v43 = vadd.f32 %v1513_v41, %v1508_v39 }
 0x566   : > { %v1517_v44 = vmax.f32 %v1515_v43, 0.0  ;;  %v1516_v45 = vadd.f32 %v1513_v41, %v1509_v42 }
 0x568   : > { %1521 = vrot.lane.b32.xlu1 %v1517_v44, %s2705_s4  ;;  %v1518_v46 = vmax.f32 %v1516_v45, 0.0 }
 0x56a   : > { %1523 = vrot.lane.b32.xlu0 %v1518_v46, %s2705_s4  ;;  %s3289_s4 = sld [smem:[#allocation26_spill]] }
 0x5da   : > { %v1522_v47 = vpop.permute.xlu1 %1521 }
 0x5db   : > { %v1528_v48 = vsel %vm833_vm3, %v1522_v47, 0.0 }
 0x5dc   : > { %v1524_v49 = vpop.permute.xlu0 %1523  ;;  %1535 = vrot.lane.b32.xlu1 %v1528_v48, %s2706_s25 }
 0x5dd   : > { %v1525_v50 = vsel %vm860_vm4, %v1522_v47, %v1524_v49 }
 0x5de   : > { %v1529_v51 = vsel %vm834_vm1, %v1525_v50, 0.0 }
 0x5df   : > { %1537 = vrot.lane.b32.xlu0 %v1529_v51, %s2706_s25 }
 0x5e0   : > { %1616 = vrot.lane.b32.xlu1 %v1528_v48, %s2697_s8 }
 0x5e3   : > { %1618 = vrot.lane.b32.xlu0 %v1529_v51, %s2697_s8  ;;  %s2707_s8 = smov 6  }
 0x5e4   : > { %1531 = vrot.lane.b32.xlu1 %v1334_v52, %s2703_s7 }
 0x5e7   : > { %1698 = vperm.xlu0 %2601, %v1335_v53  }
 0x5e8   : > { %1705 = vperm.xlu1 %2600, %v1336_v54  }
 0x5eb   : > { %1712 = vrot.lane.b32.xlu0 %v1329_v19, %s2706_s25 }
 0x5ec   : > { %1714 = vrot.lane.b32.xlu1 %v1330_v22, %s2706_s25 }
 0x64e   : > { %v1536_v55 = vpop.permute.xlu1 %1535 }
 0x651   : > { %v1538_v56 = vpop.permute.xlu0 %1537 }
 0x652   : > { %v1540_v57 = vsel %vm1539_vm11, %v1536_v55, %v1538_v56  ;;  %v1617_v58 = vpop.permute.xlu1 %1616  ;;  %1575 = vmatprep.subr.mxu1 %v1538_v56 }
 0x653   : > { %1576 = vmatpush1.msra.mxu1 %v1540_v57 }
 0x655   : > { %v1619_v59 = vpop.permute.xlu0 %1618 }
 0x656   : > { %v1620_v60 = vsel %vm1346_vm10, %v1617_v58, %v1619_v59  ;;  %v1532_v61 = vpop.permute.xlu1 %1531  ;;  %1655 = vmatprep.subr.mxu0 %v1619_v59 }
 0x657   : > { %2461 = vmatmul.mubr.msk.f32.vlgmr.msra.gmra.mxu1 %vm1057_vm8, %v1532_v61  ;;  %1656 = vmatpush1.msra.mxu0 %v1620_v60 }
 0x658   : > { %2462 = vmatmul.mubr.msk.f32.vlgmr.msra.gmra.mxu0 %vm1057_vm8, %v1334_v52  ;;  %1835 = vmatprep.mubr.f32.mxu1 %v2698_v6 }
 0x659   : > { %1923 = vmatprep.mubr.f32.mxu0 %v2698_v6 }
 0x662   : > { %v1699_v62 = vpop.permute.xlu0 %1698 }
 0x663   : > { %v1706_v63 = vpop.permute.xlu1 %1705 }
 0x666   : > { %v1713_v9 = vpop.permute.xlu0 %1712 }
 0x667   : > { %v1715_v11 = vpop.permute.xlu1 %1714 }
 0x668   : > { %v1716_v16 = vsel %vm1539_vm11, %v1713_v9, %v1715_v11 }
 0x717   : > { %v1611_v0 = vpop.f32.mrf.mxu1 }
 0x718   : > { %v1691_v1 = vpop.f32.mrf.mxu0 }
 0x719   : > { %v1692_v2 = vadd.f32 %v1691_v1, %v1611_v0  ;;  %v1613_v3 = vpop.f32.mrf.mxu1 }
 0x71a   : > { %v1693_v4 = vpop.f32.mrf.mxu0 }
 0x71b   : > { %v1701_v5 = vmul.f32 %v1699_v62, %v1692_v2  ;;  %v1694_v7 = vadd.f32 %v1693_v4, %v1613_v3 }
 0x71d   : > { %v1708_v12 = vadd.f32 %v1706_v63, %v1701_v5  ;;  %v1702_v13 = vmul.f32 %v1699_v62, %v1694_v7 }
 0x71f   : > { %v1710_v14 = vmax.f32 %v1708_v12, 0.0  ;;  %v1709_v15 = vadd.f32 %v1706_v63, %v1702_v13 }
 0x721   : > { %v1711_v17 = vmax.f32 %v1709_v15, 0.0  ;;  %v1719_v18 = vadd.f32 %v1716_v16, %v1710_v14  ;;  %v1741_v14 = vld [vmem:[%s3229_s19] sm:$0xff] }
 0x723   : > { %v1721_v19 = vmax.f32 %v1719_v18, 0.0  ;;  %v1720_v20 = vadd.f32 %v1715_v11, %v1711_v17  ;;  %v1742_v18 = vld [vmem:[%s3229_s19 + $0x8] sm:$0xff] }
 0x725   : > { %1725 = vrot.lane.b32.xlu0 %v1721_v19, %s2707_s8  ;;  %v1722_v21 = vmax.f32 %v1720_v20, 0.0  ;;  %v1745_v19 = vld [vmem:[%s3289_s4] sm:$0xff]  ;;  %v1746_v20 = vld [vmem:[%s3289_s4 + $0x8] sm:$0xff] }
 0x727   : > { %1727 = vrot.lane.b32.xlu1 %v1722_v21, %s2707_s8  ;;  %s2711_s8 = smov 112  }
 0x797   : > { %v1726_v22 = vpop.permute.xlu0 %1725 }
 0x798   : > { %v3048_v23 = vsel %vm833_vm3, %v1726_v22, 0.0 }
 0x799   : > { %v1728_v24 = vpop.permute.xlu1 %1727  ;;  %1759 = vrot.lane.b32.xlu0 %v3048_v23, %s2708_s0 }
 0x79a   : > { %v1730_v25 = vsel %vm1729_vm12, %v1726_v22, %v1728_v24 }
 0x79b   : > { %v3054_v26 = vsel %vm834_vm1, %v1730_v25, 0.0 }
 0x79c   : > { %1761 = vrot.lane.b32.xlu1 %v3054_v26, %s2708_s0 }
 0x79d   : > { %1848 = vrot.lane.b32.xlu0 %v3048_v23, %s2706_s25 }
 0x7a0   : > { %1850 = vrot.lane.b32.xlu1 %v3054_v26, %s2706_s25 }
 0x7a1   : > { %1753 = vrot.lane.b32.xlu0 %v1735_v27, %s2703_s7 }
 0x7a4   : > { %1755 = vrot.lane.b32.xlu1 %v1736_v28, %s2703_s7  ;;  %s2709_s7 = smov 10  }
 0x7a5   : > { %1943 = vperm.xlu0 %2601, %v1738_v29  }
 0x7a8   : > { %1938 = vperm.xlu1 %2600, %v1737_v30  }
 0x7a9   : > { %1957 = vperm.xlu0 %2601, %v1740_v31  }
 0x7ac   : > { %1952 = vperm.xlu1 %2600, %v1739_v32  }
 0x80b   : > { %v1760_v33 = vpop.permute.xlu0 %1759 }
 0x80e   : > { %v1762_v34 = vpop.permute.xlu1 %1761 }
 0x80f   : > { %v1764_v35 = vsel %vm1763_vm13, %v1760_v33, %v1762_v34  ;;  %v1849_v36 = vpop.permute.xlu0 %1848  ;;  %1801 = vmatprep.subr.mxu1 %v1762_v34 }
 0x810   : > { %1802 = vmatpush1.msra.mxu1 %v1764_v35 }
 0x812   : > { %v1851_v37 = vpop.permute.xlu1 %1850 }
 0x813   : > { %v1852_v38 = vsel %vm1539_vm11, %v1849_v36, %v1851_v37  ;;  %v1754_v39 = vpop.permute.xlu0 %1753  ;;  %1889 = vmatprep.subr.mxu0 %v1851_v37  ;;  %v1747_v36 = vld [vmem:[%s3291_s3] sm:$0xff] }
 0x814   : > { %2463 = vmatmul.mubr.msk.f32.vlgmr.msra.gmra.mxu1 %vm1057_vm8, %v1754_v39  ;;  %1890 = vmatpush1.msra.mxu0 %v1852_v38 }
 0x815   : > { %2465 = vmatmul.mubr.msk.f32.vlgmr.msra.gmra.mxu0 %vm1057_vm8, %v1735_v27  ;;  %1841 = vmatprep.mubr.f32.mxu1 %v2698_v6 }
 0x816   : > { %v1756_v40 = vpop.permute.xlu1 %1755  ;;  %1929 = vmatprep.mubr.f32.mxu0 %v2698_v6 }
 0x818   : > { %2464 = vmatmul.mubr.msk.f32.gmra.mxu1 %vm1057_vm8, %v1756_v40 }
 0x819   : > { %2466 = vmatmul.mubr.msk.f32.gmra.mxu0 %vm1057_vm8, %v1736_v28 }
 0x81a   : > { %2502 = vmatprep.mubr.msk.f32.mxu0 %vm2014_vm15, %v1741_v14 }
 0x820   : > { %v1944_v44 = vpop.permute.xlu0 %1943 }
 0x823   : > { %v1939_v48 = vpop.permute.xlu1 %1938 }
 0x824   : > { %v1958_v56 = vpop.permute.xlu0 %1957 }
 0x827   : > { %v1953_v60 = vpop.permute.xlu1 %1952 }
 0x8d4   : > { %v1837_v41 = vpop.f32.mrf.mxu1 }
 0x8d5   : > { %v1925_v42 = vpop.f32.mrf.mxu0 }
 0x8d6   : > { %v1839_v43 = vpop.f32.mrf.mxu1  ;;  %v1926_v46 = vadd.f32 %v1925_v42, %v1837_v41  ;;  %v1748_v41 = vld [vmem:[%s3291_s3 + $0x8] sm:$0xff] }
 0x8d7   : > { %v1927_v45 = vpop.f32.mrf.mxu0 }
 0x8d8   : > { %v1843_v47 = vpop.f32.mrf.mxu1  ;;  %v1928_v50 = vadd.f32 %v1927_v45, %v1839_v43  ;;  %v1946_v54 = vmul.f32 %v1939_v48, %v1926_v46 }
 0x8d9   : > { %v1931_v49 = vpop.f32.mrf.mxu0 }
 0x8da   : > { %v1932_v51 = vadd.f32 %v1931_v49, %v1843_v47  ;;  %v1845_v52 = vpop.f32.mrf.mxu1  ;;  %v1947_v57 = vmul.f32 %v1939_v48, %v1928_v50  ;;  %v1960_v63 = vadd.f32 %v1953_v60, %v1946_v54 }
 0x8db   : > { %v1933_v53 = vpop.f32.mrf.mxu0 }
 0x8dc   : > { %v1948_v55 = vmul.f32 %v1944_v44, %v1932_v51  ;;  %v1934_v6 = vadd.f32 %v1933_v53, %v1845_v52  ;;  %v1961_v1 = vadd.f32 %v1953_v60, %v1947_v57  ;;  %v1964_v2 = vmax.f32 %v1960_v63, 0.0 }
 0x8de   : > { %v1949_v58 = vmul.f32 %v1944_v44, %v1934_v6  ;;  %v1962_v59 = vadd.f32 %v1958_v56, %v1948_v55  ;;  %v1965_v3 = vmax.f32 %v1961_v1, 0.0 }
 0x8e0   : > { %v1966_v61 = vmax.f32 %v1962_v59, 0.0  ;;  %v1963_v62 = vadd.f32 %v1958_v56, %v1949_v58 }
 0x8e2   : > { %1976 = vrot.lane.b32.xlu0 %v1966_v61, %s2709_s7  ;;  %v1967_v0 = vmax.f32 %v1963_v62, 0.0 }
 0x8e4   : > { %1978 = vrot.lane.b32.xlu1 %v1967_v0, %s2709_s7 }
 0x8e6   : > { %1972 = vrot.lane.b32.xlu0 %v1964_v2, %s2709_s7 }
 0x8e8   : > { %1974 = vrot.lane.b32.xlu1 %v1965_v3, %s2709_s7  ;;  %s3290_s7 = sld [smem:[#allocation28_spill]] }
 0x8ee   : > { %v1749_v21 = vld [vmem:[%s3290_s7] sm:$0xff]  ;;  %v1750_v22 = vld [vmem:[%s3290_s7 + $0x8] sm:$0xff] }
 0x954   : > { %v1977_v4 = vpop.permute.xlu0 %1976 }
 0x955   : > { %v1989_v16 = vsel %vm833_vm3, %v1977_v4, 0.0 }
 0x956   : > { %v1979_v5 = vpop.permute.xlu1 %1978 }
 0x957   : > { %v1982_v15 = vsel %vm1980_vm14, %v1977_v4, %v1979_v5 }
 0x958   : > { %v1973_v7 = vpop.permute.xlu0 %1972  ;;  %v1990_v17 = vsel %vm834_vm1, %v1982_v15, 0.0 }
 0x959   : > { %v1987_v9 = vsel %vm833_vm3, %v1973_v7, 0.0 }
 0x95a   : > { %2001 = vrot.lane.b32.xlu0 %v1987_v9, %s2710_s27  ;;  %v1975_v11 = vpop.permute.xlu1 %1974 }
 0x95b   : > { %v1981_v12 = vsel %vm1980_vm14, %v1973_v7, %v1975_v11 }
 0x95c   : > { %v1988_v13 = vsel %vm834_vm1, %v1981_v12, 0.0 }
 0x95d   : > { %2003 = vrot.lane.b32.xlu1 %v1988_v13, %s2710_s27 }
 0x95e   : > { %2094 = vrot.lane.b32.xlu0 %v1987_v9, %s2708_s0 }
 0x961   : > { %2096 = vrot.lane.b32.xlu1 %v1988_v13, %s2708_s0 }
 0x962   : > { %2005 = vrot.lane.b32.xlu0 %v1989_v16, %s2710_s27 }
 0x965   : > { %2007 = vrot.lane.b32.xlu1 %v1990_v17, %s2710_s27 }
 0x966   : > { %2098 = vrot.lane.b32.xlu0 %v1989_v16, %s2708_s0 }
 0x969   : > { %2100 = vrot.lane.b32.xlu1 %v1990_v17, %s2708_s0  ;;  %s2435_s0 = sshll.u32 %s788_s30, 4 }
 0x96a   : > { %1993 = vrot.lane.b32.xlu0 %v1741_v14, %s2711_s8  ;;  %s790_s23 = scalar_lea.vmem [#allocation2], %s2435_s0  ;;  %s2712_s0 = smov [#allocation2]  }
 0x96b   : > { %s2329_s25 = sshll.u32 %s790_s23, 4  ;;  %s2606_s29 = sshll.u32 %s2712_s0, 4  ;;  %s3150_s25 = int_to_ptr.vmem [resolvable:$true] %s2329_s25  ;;  %s2607_s29 = int_to_ptr.vmem [resolvable:$false] %s2606_s29 }
 0x96c   : > { %s2602_s2 = scalar_lea.vmem %s3150_s25, 256  ;;  %p2609_p6 = scmp.lt.s32.totalorder %s3150_s25, %s2607_s29 }
 0x96d   : > { %1995 = vrot.lane.b32.xlu1 %v1742_v18, %s2711_s8  ;;  %s3296_s8 = smov %s3295_s6  ;;  %p2603_p2 = scmp.ne.s32.totalorder %s3150_s25, %s2602_s2 }
 0x96e   : > { %2221 = vrot.lane.b32.xlu0 %v3048_v23, %s2710_s27 }
 0x96f   : > { %p2604_p4 = pnand %p2603_p2, %p2892_p3 }
 0x971   : > { %2223 = vrot.lane.b32.xlu1 %v3054_v26, %s2710_s27  ;;  %s2475_s27 = sshll.u32 %s2326_s21, 7  ;;  %p2605_p5 = pneg %p2604_p4 }
 0x972   : > { %2187 = vperm.xlu0 %2601, %v1743_v10   ;;  %s3155_s22 = scalar_lea.hbm %s3295_s6, %s2475_s27  ;;  %s2608_s21 = scalar_lea.vmem %s2607_s29, 512 }
 0x973   : > { %p2610_p7 = scmp.lt.s32.totalorder %s2608_s21, %s2602_s2 }
 0x975   : > { %2192 = vperm.xlu1 %2600, %v1744_v8   ;;  %p2611_p9 = por %p2610_p7, %p2609_p6 }
 0x976   : > { %2199 = vperm.xlu0 %2601, %v1745_v19  }
 0x977   : > { %p2612_p10 = pnand %p2611_p9, %p2605_p5 }
 0x979   : > { %2204 = vperm.xlu1 %2600, %v1746_v20  }
 0x97a   : > { %2213 = vperm.xlu0 %2601, %v1749_v21  }
 0x97d   : > { %2218 = vperm.xlu1 %2600, %v1750_v22  }
 0x9cc   : > { %v2002_v23 = vpop.permute.xlu0 %2001 }
 0x9cf   : > { %v2004_v24 = vpop.permute.xlu1 %2003 }
 0x9d0   : > { %v2095_v25 = vpop.permute.xlu0 %2094  ;;  %v2010_v31 = vsel %vm2009_vm0, %v2002_v23, %v2004_v24 }
 0x9d3   : > { %v2097_v26 = vpop.permute.xlu1 %2096 }
 0x9d4   : > { %v2006_v27 = vpop.permute.xlu0 %2005  ;;  %v2102_v35 = vsel %vm1763_vm13, %v2095_v25, %v2097_v26 }
 0x9d7   : > { %v2008_v28 = vpop.permute.xlu1 %2007 }
 0x9d8   : > { %v2099_v29 = vpop.permute.xlu0 %2098  ;;  %v2011_v30 = vsel %vm2009_vm0, %v2006_v27, %v2008_v28 }
 0x9d9   : > { %2491 = vmatprep.subr.mxu1 %v2011_v30 }
 0x9da   : > { %2492 = vmatpush3.msra.mxu1 %v2011_v30 }
 0x9db   : > { %2493 = vmatprep.subr.mxu1 %v2010_v31  ;;  %v2101_v32 = vpop.permute.xlu1 %2100 }
 0x9dc   : > { %v1994_v33 = vpop.permute.xlu0 %1993  ;;  %2494 = vmatpush3.msra.mxu1 %v2010_v31  ;;  %v2103_v34 = vsel %vm1763_vm13, %v2099_v29, %v2101_v32 }
 0x9dd   : > { %2498 = vmatprep.subr.mxu0 %v2103_v34  ;;  %2495 = vmatprep.mubr.msk.f32.mxu1 %vm2014_vm15, %v1994_v33 }
 0x9de   : > { %2499 = vmatpush3.msra.mxu0 %v2103_v34 }
 0x9df   : > { %2500 = vmatprep.subr.mxu0 %v2102_v35  ;;  %v1996_v37 = vpop.permute.xlu1 %1995 }
 0x9e0   : > { %2496 = vmatmul.mubr.msk.f32.vlgmr.msra.gmra.mxu1 %vm2014_vm15, %v1996_v37  ;;  %2501 = vmatpush3.msra.mxu0 %v2102_v35  ;;  %v2222_v38 = vpop.permute.xlu0 %2221 }
 0x9e1   : > { %2503 = vmatmul.mubr.msk.f32.vlgmr.msra.gmra.mxu0 %vm2014_vm15, %v1742_v18  ;;  %2507 = vmatprep.mubr.msk.f32.mxu1 %vm1057_vm8, %v1747_v36 }
 0x9e3   : > { %v2224_v39 = vpop.permute.xlu1 %2223 }
 0x9e4   : > { %v2225_v40 = vsel %vm2009_vm0, %v2222_v38, %v2224_v39 }
 0x9e5   : > { %2505 = vmatprep.subr.mxu1 %v2225_v40 }
 0x9e6   : > { %2506 = vmatpush3.msra.mxu1 %v2225_v40 }
 0x9e7   : > { %2508 = vmatmul.mubr.msk.f32.vlgmr.msra.gmra.mxu1 %vm1057_vm8, %v1748_v41 }
 0x9ed   : > { %v2188_v43 = vpop.permute.xlu0 %2187 }
 0x9f0   : > { %v2193_v42 = vpop.permute.xlu1 %2192 }
 0x9f1   : > { %v2200_v49 = vpop.permute.xlu0 %2199 }
 0x9f4   : > { %v2205_v45 = vpop.permute.xlu1 %2204 }
 0x9f5   : > { %v2214_v59 = vpop.permute.xlu0 %2213 }
 0x9f8   : > { %v2219_v55 = vpop.permute.xlu1 %2218 }
 0xaa0   : > { %v2497_v44 = vpop.f32.mrf.mxu1 }
 0xaa1   : > { %v2504_v46 = vpop.f32.mrf.mxu0 }
 0xaa2   : > { %v2182_v47 = vadd.f32 %v2504_v46, %v2497_v44  ;;  %v2085_v48 = vpop.f32.mrf.mxu1 }
 0xaa3   : > { %v2176_v50 = vpop.f32.mrf.mxu0 }
 0xaa4   : > { %v2196_v51 = vmul.f32 %v2193_v42, %v2182_v47  ;;  %v2177_v52 = vadd.f32 %v2176_v50, %v2085_v48 }
 0xaa6   : > { %v2208_v53 = vadd.f32 %v2205_v45, %v2196_v51  ;;  %v2195_v54 = vmul.f32 %v2188_v43, %v2177_v52 }
 0xaa7   : > { %v2509_v6 = vpop.f32.mrf.mxu1 }
 0xaa8   : > { %v2207_v56 = vadd.f32 %v2200_v49, %v2195_v54  ;;  %v2210_v57 = vmax.f32 %v2208_v53, 0.0  ;;  %v2305_v58 = vadd.f32 %v2509_v6, %v2219_v55 }
 0xaa9   : > { %v2299_v60 = vpop.f32.mrf.mxu1 }
 0xaaa   : > { %v2309_v61 = vadd.f32 %v2305_v58, %v2210_v57  ;;  %v2209_v62 = vmax.f32 %v2207_v56, 0.0  ;;  %v2300_v63 = vadd.f32 %v2299_v60, %v2214_v59 }
 0xaac   : > { %v2311_v0 = vmax.f32 %v2309_v61, 0.0  ;;  %v2308_v1 = vadd.f32 %v2300_v63, %v2209_v62 }
 0xaae   : > { %2313 = vst [vmem:[%s790_s23 + $0x8] sm:$0xff] %v2311_v0  ;;  %v2310_v2 = vmax.f32 %v2308_v1, 0.0 }
 0xab0   : > { %2312 = vst [vmem:[%s790_s23] sm:$0xff] %v2310_v2 }
 0xab1   : > { %2615 = shalt.err (!%p2612_p10)
}
 0xab2   : > { %s2616_s1 = scalar_lea.hbm %s3155_s22, 256  ;;  %s2620_s27 = scalar_lea.hbm %s3296_s8, 1024 }
 0xab3   : > { %p2617_p11 = scmp.ne.s32.totalorder %s3155_s22, %s2616_s1  ;;  %p2621_p0 = scmp.lt.s32.totalorder %s3155_s22, %s3296_s8 }
 0xab4   : > { %p2622_p1 = scmp.lt.s32.totalorder %s2620_s27, %s2616_s1 }
 0xab5   : > { %p2618_p12 = pnand %p2617_p11, %p2892_p3 }
 0xab6   : > { %p2623_p2 = por %p2622_p1, %p2621_p0 }
 0xab7   : > { %p2619_p13 = pneg %p2618_p12 }
 0xab9   : > { %p2624_p4 = pnand %p2623_p2, %p2619_p13 }
 0xabb   : > { %2627 = shalt.err (!%p2624_p4)
}
 0xabc   : > { %s2713_s6 = smov 128   ;;  %s2714_s2 = smov 256  }
 0xabd   : > { %s2715_s0 = smov 8  }
 0xabe   : > { %2510 = dma.vmem_to_hbm [thread:$0]  (%p2892_p3), %s3150_s25, 256, %s3155_s22, %s3159_s24, %s2713_s6, %s2714_s2, %s2715_s0  }
 0xabf PF: > { %s3297_s29 = sld [smem:[#allocation11_spill]] }
 0xac0   : > { %s3298_s21 = sld [smem:[#allocation5_spill]] }
 0xac5   : > { %p2516_p5 = scmp.ge.s32.totalorder %s3297_s29, 2 }
 0xac6   : > { %s2344_s23 = sand.u32 1, %s3298_s21  }
 0xac7   : > { %p2513_p6 = pnand %p2516_p5, %p2901_p8  ;;  %s2345_s1 = scalar_lea.sflag [#allocation3], %s2344_s23 }
 0xac9   : > { %p2514_p7 = pneg %p2513_p6 }
 0xacb   : > { %2661 = dma.done.wait (%p2514_p7), %s2345_s1, 256  }
 0xacc   : > { %2663 = vsyncadd (%p2514_p7), %s2345_s1, 4294967040  ;;  %s37_s0 = sadd.s32 1, %s3297_s29   ;;  %s3300_s5 = sld [smem:[#allocation6_spill]] }
 0xacd   : > { %p34_p9 = scmp.ge.s32.totalorder %s37_s0, 6   ;;  %s3301_s26 = sld [smem:[#allocation7_spill]] }
 0xace   : > { %s3302_s27 = sld [smem:[#allocation16_spill]] }
 0xacf   : > { %s3303_s28 = sld [smem:[#allocation9_spill]]  ;;  %36 = sbr.rel (!%p34_p9) target bundleno = 19 (0x13), region = 154 }
 0xad0   : > { %s3304_s6 = sld [smem:[#allocation10_spill]] }
 0xad1   : > { %s3305_s2 = sld [smem:[#allocation12_spill]] }
 0xad2   : > { %s3306_s29 = sld [smem:[#allocation14_spill]] }
 0xad4   :  { %2350 = vsyncpa [#allocation3], 1 }
 0xad5   :  { %2352 = vsyncpa [#allocation3 + $0x1], 1 }

</bundles_post_ra>
